<compile_context>
chip_gen: v7x
topology: tpu7x:2x2x1
jax: 0.10.0
libtpu: 0.0.40
codegen_flags: <defaults>
</compile_context>

<pallas_src>
import jax
import jax.numpy as jnp
from jax.experimental import pallas as pl
from jax.experimental.pallas import tpu as pltpu


def attn_kernel(x_ref, w1_ref, b1_ref, w2_ref, ctx_ref, wts_ref):
    # x_ref:   (TB, S, H)  f32 block of TB batch elements
    # w1_ref:  (H, H) = W1^T in the MXU dtype (f32 or bf16), grid-invariant
    # b1_ref:  (1, H)  f32, grid-invariant
    # w2_ref:  (H, 1) = W2^T column, f32, grid-invariant
    # ctx_ref: (TB, H)    f32
    # wts_ref: (TB*S, 1)  f32 (sublane-major; wrapper reshapes to (B, S, 1))
    TB, S, H = x_ref.shape
    mm_dtype = w1_ref.dtype

    # Hidden layer: one big MXU matmul for the whole block.  The bf16 cast (if
    # any) happens here on the operand, not in the wrapper.  The leading-dim
    # collapse (TB, S, H) -> (TB*S, H) is a pure view (minor dims unchanged).
    x2 = x_ref[...].reshape(TB * S, H)
    h = jnp.tanh(
        jnp.dot(x2.astype(mm_dtype), w1_ref[...],
                preferred_element_type=jnp.float32)
        + b1_ref[...]
    )                                                       # (TB*S, H) f32

    # Scores on the MXU (its slot is idle after the matmul above), kept
    # sublane-major so no lane<->sublane relayout is needed before or after
    # the softmax.  b2 omitted: a constant shift is a no-op under the softmax.
    scores = jnp.dot(h, w2_ref[...],
                     preferred_element_type=jnp.float32)    # (TB*S, 1)
    scores = scores.reshape(TB, S, 1)                       # free leading split

    # Softmax over the sequence axis (the S sublanes).
    m = jnp.max(scores, axis=1, keepdims=True)
    e = jnp.exp(scores - m)
    wts = e / jnp.sum(e, axis=1, keepdims=True)             # (TB, S, 1) f32
    wts_ref[...] = wts.reshape(TB * S, 1).astype(wts_ref.dtype)

    # Context: broadcast wts over lanes (H), reduce over the S sublanes.
    # x is re-read from VMEM here so the matmul operand's live range ends at
    # the dot above (bounds the vreg working set as TB grows).  For very
    # large TB*S*H, stream this accumulation over S chunks with
    # lax.fori_loop(..., unroll=True) instead of one full-block read.
    ctx = jnp.sum(wts * x_ref[...], axis=1)                 # (TB, H) f32
    ctx_ref[...] = ctx.astype(ctx_ref.dtype)


def _num_tensorcores():
    """Best-effort TensorCores-per-chip query (v7x has 2, v5e/v6e have 1)."""
    try:
        info = pltpu.get_tpu_info()
        for name in ("num_cores", "tensorcore_count", "num_tensorcores",
                     "cores_per_chip", "core_count"):
            n = getattr(info, name, None)
            if isinstance(n, int) and n > 0:
                return n
    except Exception:
        pass
    try:
        kind = jax.devices()[0].device_kind.lower()
        if "v7" in kind or "7x" in kind:
            return 2
    except Exception:
        pass
    return 1


def _vmem_budget_bytes():
    """Conservative per-step VMEM budget (stays under every chip's default
    scoped limit: 16 MiB on v5e, 32 MiB on v6e/v7x)."""
    budget = 12 << 20
    try:
        cap = getattr(pltpu.get_tpu_info(), "vmem_capacity_bytes", None)
        if isinstance(cap, int) and cap > 0:
            budget = min(budget, cap // 8)
    except Exception:
        pass
    return budget


def _pick_block_batch(B, S, H, *, num_cores, vmem_budget_bytes):
    """Pick TB (batch elements per grid step).

    - VMEM bound:  double-buffered x block + double-buffered outputs (plus the
                   invariant weights) must fit the budget.
    - Alignment:   TB % 8 == 0 (sublane tile for the (TB, H) context block)
                   unless TB == B (full-array block is always legal).
    - Megacore:    on multi-TC chips keep the grid >= num_cores and a multiple
                   of num_cores so ("parallel",) splits evenly; on 1-TC chips
                   simply take the largest block that fits (grid may be 1).
    """
    inv_bytes = 2 * (H * H + 2 * H) * 4               # invariant weights (worst case)
    bytes_per_b = 2 * (S * H * 4) + 2 * (H + S) * 4   # x (dbl-buf) + ctx/wts (dbl-buf)
    budget = max(bytes_per_b, vmem_budget_bytes - inv_bytes)
    tb_vmem = max(1, budget // bytes_per_b)
    tb_cap = B if num_cores <= 1 else max(1, B // num_cores)
    tb_goal = max(1, min(B, tb_cap, tb_vmem))

    def ok(tb):
        if B % tb != 0:
            return False
        if tb % 8 != 0 and tb != B:
            return False
        g = B // tb
        if num_cores > 1 and (g < num_cores or g % num_cores != 0):
            return False
        return True

    for tb in range(tb_goal, 0, -1):
        if ok(tb):
            return tb
    # Fallback: one block for the whole batch. Always legal (full-array block);
    # on v7x this idles one TensorCore for awkward B (perf, not correctness).
    return B


def prepare_attention_params(w1, b1, w2, b2=None, *, matmul_dtype=jnp.float32):
    """One-time parameter prep, hoisted off the per-call hot path:
       - W1^T (kernel computes x @ W1^T), cast to the MXU dtype,
       - b1 as a (1, H) f32 row,
       - W2^T as an (H, 1) f32 column (sublane-major score matmul),
       - b2 dropped: a constant shift is a no-op under the softmax."""
    H = w1.shape[0]
    return {
        "w1_t": jnp.asarray(w1).T.astype(matmul_dtype),
        "b1_row": jnp.asarray(b1).reshape(1, H).astype(jnp.float32),
        "w2_col": jnp.asarray(w2).reshape(H, 1).astype(jnp.float32),
    }


def attention_layer(x, params):
    """x: (B, S, H) f32. Returns (context (B, H), weights (B, S, 1))."""
    B, S, H = x.shape
    num_cores = _num_tensorcores()
    TB = _pick_block_batch(B, S, H, num_cores=num_cores,
                           vmem_budget_bytes=_vmem_budget_bytes())
    grid = (B // TB,)

    w1_t, b1_row, w2_col = params["w1_t"], params["b1_row"], params["w2_col"]

    def run(single_buffer_invariants):
        if single_buffer_invariants:
            # Grid-invariant operands: single-buffer them so they don't eat
            # double VMEM when H is large (most important on v7x).
            def inv(shape):
                return pl.BlockSpec(shape, lambda b: (0,) * len(shape),
                                    pipeline_mode=pl.Buffered(1))
        else:
            def inv(shape):
                return pl.BlockSpec(shape, lambda b: (0,) * len(shape))

        return pl.pallas_call(
            attn_kernel,
            out_shape=(
                jax.ShapeDtypeStruct((B, H), jnp.float32),
                jax.ShapeDtypeStruct((B * S, 1), jnp.float32),
            ),
            grid_spec=pltpu.PrefetchScalarGridSpec(
                num_scalar_prefetch=0,
                grid=grid,
                in_specs=[
                    pl.BlockSpec((TB, S, H), lambda b: (b, 0, 0)),  # x (f32, no wrapper cast)
                    inv((H, H)),                                     # W1^T (invariant)
                    inv((1, H)),                                     # b1
                    inv((H, 1)),                                     # W2^T column
                ],
                out_specs=[
                    pl.BlockSpec((TB, H), lambda b: (b, 0)),         # context
                    pl.BlockSpec((TB * S, 1), lambda b: (b, 0)),     # weights (sublane-major)
                ],
            ),
            compiler_params=pltpu.CompilerParams(
                dimension_semantics=("parallel",),   # batch axis splits across TCs
            ),
        )(x, w1_t, b1_row, w2_col)

    try:
        ctx, wts_flat = run(True)
    except Exception:
        # pipeline_mode=pl.Buffered(1) unsupported on this jax/Mosaic version:
        # fall back to default double-buffering of the invariant operands.
        ctx, wts_flat = run(False)

    # Match the PyTorch module's (B, S, 1) weights shape (free metadata reshape).
    return ctx, wts_flat.reshape(B, S, 1)


def reference(x, w1, b1, w2, b2):
    # Pure-JAX reference (keeps b2; it is a softmax no-op).
    h = jnp.tanh(jnp.einsum("bsh,oh->bso", x, w1) + b1)
    scores = jnp.einsum("bsh,oh->bso", h, w2) + b2           # (B, S, 1)
    wts = jax.nn.softmax(scores, axis=1)
    ctx = jnp.einsum("bso,bsh->boh", wts, x)[:, 0, :]        # (B, H)
    return ctx, wts


if __name__ == "__main__":
    B, S, H = 16, 8, 32
    key = jax.random.PRNGKey(0)
    kx, k1, k2, k3, k4 = jax.random.split(key, 5)

    x = jax.random.normal(kx, (B, S, H), dtype=jnp.float32)

    # Deterministic Linear-style init (uniform in +/- 1/sqrt(fan_in)).
    bound = 1.0 / (H ** 0.5)
    w1 = jax.random.uniform(k1, (H, H), jnp.float32, -bound, bound)  # (out, in)
    b1 = jax.random.uniform(k2, (H,), jnp.float32, -bound, bound)
    w2 = jax.random.uniform(k3, (1, H), jnp.float32, -bound, bound)  # (out=1, in)
    b2 = jax.random.uniform(k4, (1,), jnp.float32, -bound, bound)

    ctx_ref_, wts_ref_ = reference(x, w1, b1, w2, b2)

    # f32 MXU path: tight check against the reference.
    params_f32 = prepare_attention_params(w1, b1, w2, b2, matmul_dtype=jnp.float32)
    ctx, wts = attention_layer(x, params_f32)
    jax.block_until_ready((ctx, wts))
    assert ctx.shape == (B, H) and wts.shape == (B, S, 1)
    assert jnp.allclose(ctx, ctx_ref_, atol=1e-4, rtol=1e-4)
    assert jnp.allclose(wts, wts_ref_, atol=1e-4, rtol=1e-4)

    # bf16 MXU-operand path (x stays f32 in HBM; cast in-kernel at the dot,
    # f32 accumulation and f32 context): loose check.
    params_bf16 = prepare_attention_params(w1, b1, w2, b2, matmul_dtype=jnp.bfloat16)
    ctx_bf, wts_bf = attention_layer(x, params_bf16)
    jax.block_until_ready((ctx_bf, wts_bf))
    assert jnp.allclose(ctx_bf, ctx_ref_, atol=5e-2, rtol=5e-2)
    assert jnp.allclose(wts_bf, wts_ref_, atol=5e-2, rtol=5e-2)

    print("KERNEL_OK")
</pallas_src>

<mosaic_0001>
module attributes {stable_mosaic.version = 11 : i64} {
  func.func @attn_kernel(%arg0: i32, %arg1: memref<16x8x32xf32, #tpu.memory_space<vmem>>, %arg2: memref<32x32xf32, #tpu.memory_space<vmem>>, %arg3: memref<1x32xf32, #tpu.memory_space<vmem>>, %arg4: memref<32x1xf32, #tpu.memory_space<vmem>>, %arg5: memref<16x32xf32, #tpu.memory_space<vmem>>, %arg6: memref<128x1xf32, #tpu.memory_space<vmem>>) attributes {dimension_semantics = [#tpu.dimension_semantics<parallel>], iteration_bounds = array<i64: 1>, scalar_prefetch = 0 : i64, scratch_operands = 0 : i64, tpu.core_type = #tpu.core_type<tc>, window_params = [{transform_indices = @transform_0, window_bounds = array<i64: 16, 8, 32>}, {pipeline_mode = #tpu.pipeline_mode<synchronous>, transform_indices = @transform_1, window_bounds = array<i64: 32, 32>}, {pipeline_mode = #tpu.pipeline_mode<synchronous>, transform_indices = @transform_2, window_bounds = array<i64: 1, 32>}, {pipeline_mode = #tpu.pipeline_mode<synchronous>, transform_indices = @transform_3, window_bounds = array<i64: 32, 1>}, {transform_indices = @transform_4, window_bounds = array<i64: 16, 32>}, {transform_indices = @transform_5, window_bounds = array<i64: 128, 1>}]} {
    %c0 = arith.constant 0 : index
    %c0_0 = arith.constant 0 : index
    %c0_1 = arith.constant 0 : index
    %0 = vector.load %arg1[%c0, %c0_0, %c0_1] : memref<16x8x32xf32, #tpu.memory_space<vmem>>, vector<16x8x32xf32>
    %1 = vector.shape_cast %0 : vector<16x8x32xf32> to vector<128x32xf32>
    %c0_2 = arith.constant 0 : index
    %c0_3 = arith.constant 0 : index
    %2 = vector.load %arg2[%c0_2, %c0_3] : memref<32x32xf32, #tpu.memory_space<vmem>>, vector<32x32xf32>
    %cst = arith.constant dense<0.000000e+00> : vector<128x32xf32>
    %3 = tpu.matmul %1, %2, %cst {dimension_numbers = #tpu.dot_dimension_numbers<[1], [0], [0], [1], [0, 0, 1, 1], [], []>} : vector<128x32xf32>, vector<32x32xf32>, vector<128x32xf32> -> vector<128x32xf32>
    %c0_4 = arith.constant 0 : index
    %c0_5 = arith.constant 0 : index
    %4 = vector.load %arg3[%c0_4, %c0_5] : memref<1x32xf32, #tpu.memory_space<vmem>>, vector<1x32xf32>
    %5 = vector.broadcast %4 : vector<1x32xf32> to vector<128x32xf32>
    %6 = arith.addf %3, %5 : vector<128x32xf32>
    %7 = math.tanh %6 : vector<128x32xf32>
    %c0_6 = arith.constant 0 : index
    %c0_7 = arith.constant 0 : index
    %8 = vector.load %arg4[%c0_6, %c0_7] : memref<32x1xf32, #tpu.memory_space<vmem>>, vector<32x1xf32>
    %cst_8 = arith.constant dense<0.000000e+00> : vector<128x1xf32>
    %9 = tpu.matmul %7, %8, %cst_8 {dimension_numbers = #tpu.dot_dimension_numbers<[1], [0], [0], [1], [0, 0, 1, 1], [], []>} : vector<128x32xf32>, vector<32x1xf32>, vector<128x1xf32> -> vector<128x1xf32>
    %10 = vector.shape_cast %9 : vector<128x1xf32> to vector<16x8x1xf32>
    %cst_9 = arith.constant dense<0xFF800000> : vector<16x1xf32>
    %11 = vector.multi_reduction <maximumf>, %10, %cst_9 [1] : vector<16x8x1xf32> to vector<16x1xf32>
    %12 = vector.shape_cast %11 : vector<16x1xf32> to vector<16x1x1xf32>
    %13 = vector.broadcast %12 : vector<16x1x1xf32> to vector<16x8x1xf32>
    %14 = arith.subf %10, %13 : vector<16x8x1xf32>
    %15 = math.exp %14 : vector<16x8x1xf32>
    %cst_10 = arith.constant dense<0.000000e+00> : vector<16x1xf32>
    %16 = vector.multi_reduction <add>, %15, %cst_10 [1] : vector<16x8x1xf32> to vector<16x1xf32>
    %17 = vector.shape_cast %16 : vector<16x1xf32> to vector<16x1x1xf32>
    %18 = vector.broadcast %17 : vector<16x1x1xf32> to vector<16x8x1xf32>
    %19 = arith.divf %15, %18 : vector<16x8x1xf32>
    %20 = vector.shape_cast %19 : vector<16x8x1xf32> to vector<128x1xf32>
    %c0_11 = arith.constant 0 : index
    %c0_12 = arith.constant 0 : index
    %21 = vector.load %arg6[%c0_11, %c0_12] : memref<128x1xf32, #tpu.memory_space<vmem>>, vector<128x1xf32>
    tpu.vector_store %arg6[%c0_11, %c0_12], %20 {strides = array<i32>} : memref<128x1xf32, #tpu.memory_space<vmem>>, vector<128x1xf32>,
    %c0_13 = arith.constant 0 : index
    %c0_14 = arith.constant 0 : index
    %c0_15 = arith.constant 0 : index
    %22 = vector.load %arg1[%c0_13, %c0_14, %c0_15] : memref<16x8x32xf32, #tpu.memory_space<vmem>>, vector<16x8x32xf32>
    %23 = vector.broadcast %19 : vector<16x8x1xf32> to vector<16x8x32xf32>
    %24 = arith.mulf %23, %22 : vector<16x8x32xf32>
    %cst_16 = arith.constant dense<0.000000e+00> : vector<16x32xf32>
    %25 = vector.multi_reduction <add>, %24, %cst_16 [1] : vector<16x8x32xf32> to vector<16x32xf32>
    %c0_17 = arith.constant 0 : index
    %c0_18 = arith.constant 0 : index
    %26 = vector.load %arg5[%c0_17, %c0_18] : memref<16x32xf32, #tpu.memory_space<vmem>>, vector<16x32xf32>
    tpu.vector_store %arg5[%c0_17, %c0_18], %25 {strides = array<i32>} : memref<16x32xf32, #tpu.memory_space<vmem>>, vector<16x32xf32>,
    return
  }
  func.func @transform_0(%arg0: i32) -> (i32, i32, i32) {
    %c0_i32 = arith.constant 0 : i32
    %c0_i32_0 = arith.constant 0 : i32
    %c0_i32_1 = arith.constant 0 : i32
    return %arg0, %c0_i32, %c0_i32_0 : i32, i32, i32
  }
  func.func @transform_1(%arg0: i32) -> (i32, i32) {
    %c0_i32 = arith.constant 0 : i32
    %c0_i32_0 = arith.constant 0 : i32
    %c0_i32_1 = arith.constant 0 : i32
    return %c0_i32, %c0_i32_0 : i32, i32
  }
  func.func @transform_2(%arg0: i32) -> (i32, i32) {
    %c0_i32 = arith.constant 0 : i32
    %c0_i32_0 = arith.constant 0 : i32
    %c0_i32_1 = arith.constant 0 : i32
    return %c0_i32, %c0_i32_0 : i32, i32
  }
  func.func @transform_3(%arg0: i32) -> (i32, i32) {
    %c0_i32 = arith.constant 0 : i32
    %c0_i32_0 = arith.constant 0 : i32
    %c0_i32_1 = arith.constant 0 : i32
    return %c0_i32, %c0_i32_0 : i32, i32
  }
  func.func @transform_4(%arg0: i32) -> (i32, i32) {
    %c0_i32 = arith.constant 0 : i32
    %c0_i32_0 = arith.constant 0 : i32
    return %arg0, %c0_i32 : i32, i32
  }
  func.func @transform_5(%arg0: i32) -> (i32, i32) {
    %c0_i32 = arith.constant 0 : i32
    %c0_i32_0 = arith.constant 0 : i32
    return %arg0, %c0_i32 : i32, i32
  }
}

module attributes {stable_mosaic.version = 11 : i64} {
  func.func @attn_kernel(%arg0: i32, %arg1: memref<16x8x32xf32, #tpu.memory_space<vmem>>, %arg2: memref<32x32xf32, #tpu.memory_space<vmem>>, %arg3: memref<1x32xf32, #tpu.memory_space<vmem>>, %arg4: memref<32x1xf32, #tpu.memory_space<vmem>>, %arg5: memref<16x32xf32, #tpu.memory_space<vmem>>, %arg6: memref<128x1xf32, #tpu.memory_space<vmem>>) attributes {dimension_semantics = [#tpu.dimension_semantics<parallel>], iteration_bounds = array<i64: 1>, scalar_prefetch = 0 : i64, scratch_operands = 0 : i64, tpu.core_type = #tpu.core_type<tc>, window_params = [{transform_indices = @transform_0, window_bounds = array<i64: 16, 8, 32>}, {pipeline_mode = #tpu.pipeline_mode<synchronous>, transform_indices = @transform_1, window_bounds = array<i64: 32, 32>}, {pipeline_mode = #tpu.pipeline_mode<synchronous>, transform_indices = @transform_2, window_bounds = array<i64: 1, 32>}, {pipeline_mode = #tpu.pipeline_mode<synchronous>, transform_indices = @transform_3, window_bounds = array<i64: 32, 1>}, {transform_indices = @transform_4, window_bounds = array<i64: 16, 32>}, {transform_indices = @transform_5, window_bounds = array<i64: 128, 1>}]} {
    %c0 = arith.constant 0 : index
    %c0_0 = arith.constant 0 : index
    %c0_1 = arith.constant 0 : index
    %0 = vector.load %arg1[%c0, %c0_0, %c0_1] : memref<16x8x32xf32, #tpu.memory_space<vmem>>, vector<16x8x32xf32>
    %1 = vector.shape_cast %0 : vector<16x8x32xf32> to vector<128x32xf32>
    %c0_2 = arith.constant 0 : index
    %c0_3 = arith.constant 0 : index
    %2 = vector.load %arg2[%c0_2, %c0_3] : memref<32x32xf32, #tpu.memory_space<vmem>>, vector<32x32xf32>
    %cst = arith.constant dense<0.000000e+00> : vector<128x32xf32>
    %3 = tpu.matmul %1, %2, %cst {dimension_numbers = #tpu.dot_dimension_numbers<[1], [0], [0], [1], [0, 0, 1, 1], [], []>} : vector<128x32xf32>, vector<32x32xf32>, vector<128x32xf32> -> vector<128x32xf32>
    %c0_4 = arith.constant 0 : index
    %c0_5 = arith.constant 0 : index
    %4 = vector.load %arg3[%c0_4, %c0_5] : memref<1x32xf32, #tpu.memory_space<vmem>>, vector<1x32xf32>
    %5 = vector.broadcast %4 : vector<1x32xf32> to vector<128x32xf32>
    %6 = arith.addf %3, %5 : vector<128x32xf32>
    %7 = math.tanh %6 : vector<128x32xf32>
    %c0_6 = arith.constant 0 : index
    %c0_7 = arith.constant 0 : index
    %8 = vector.load %arg4[%c0_6, %c0_7] : memref<32x1xf32, #tpu.memory_space<vmem>>, vector<32x1xf32>
    %cst_8 = arith.constant dense<0.000000e+00> : vector<128x1xf32>
    %9 = tpu.matmul %7, %8, %cst_8 {dimension_numbers = #tpu.dot_dimension_numbers<[1], [0], [0], [1], [0, 0, 1, 1], [], []>} : vector<128x32xf32>, vector<32x1xf32>, vector<128x1xf32> -> vector<128x1xf32>
    %10 = vector.shape_cast %9 : vector<128x1xf32> to vector<16x8x1xf32>
    %cst_9 = arith.constant dense<0xFF800000> : vector<16x1xf32>
    %11 = vector.multi_reduction <maximumf>, %10, %cst_9 [1] : vector<16x8x1xf32> to vector<16x1xf32>
    %12 = vector.shape_cast %11 : vector<16x1xf32> to vector<16x1x1xf32>
    %13 = vector.broadcast %12 : vector<16x1x1xf32> to vector<16x8x1xf32>
    %14 = arith.subf %10, %13 : vector<16x8x1xf32>
    %15 = math.exp %14 : vector<16x8x1xf32>
    %cst_10 = arith.constant dense<0.000000e+00> : vector<16x1xf32>
    %16 = vector.multi_reduction <add>, %15, %cst_10 [1] : vector<16x8x1xf32> to vector<16x1xf32>
    %17 = vector.shape_cast %16 : vector<16x1xf32> to vector<16x1x1xf32>
    %18 = vector.broadcast %17 : vector<16x1x1xf32> to vector<16x8x1xf32>
    %19 = arith.divf %15, %18 : vector<16x8x1xf32>
    %20 = vector.shape_cast %19 : vector<16x8x1xf32> to vector<128x1xf32>
    %c0_11 = arith.constant 0 : index
    %c0_12 = arith.constant 0 : index
    %21 = vector.load %arg6[%c0_11, %c0_12] : memref<128x1xf32, #tpu.memory_space<vmem>>, vector<128x1xf32>
    tpu.vector_store %arg6[%c0_11, %c0_12], %20 {strides = array<i32>} : memref<128x1xf32, #tpu.memory_space<vmem>>, vector<128x1xf32>,
    %c0_13 = arith.constant 0 : index
    %c0_14 = arith.constant 0 : index
    %c0_15 = arith.constant 0 : index
    %22 = vector.load %arg1[%c0_13, %c0_14, %c0_15] : memref<16x8x32xf32, #tpu.memory_space<vmem>>, vector<16x8x32xf32>
    %23 = vector.broadcast %19 : vector<16x8x1xf32> to vector<16x8x32xf32>
    %24 = arith.mulf %23, %22 : vector<16x8x32xf32>
    %cst_16 = arith.constant dense<0.000000e+00> : vector<16x32xf32>
    %25 = vector.multi_reduction <add>, %24, %cst_16 [1] : vector<16x8x32xf32> to vector<16x32xf32>
    %c0_17 = arith.constant 0 : index
    %c0_18 = arith.constant 0 : index
    %26 = vector.load %arg5[%c0_17, %c0_18] : memref<16x32xf32, #tpu.memory_space<vmem>>, vector<16x32xf32>
    tpu.vector_store %arg5[%c0_17, %c0_18], %25 {strides = array<i32>} : memref<16x32xf32, #tpu.memory_space<vmem>>, vector<16x32xf32>,
    return
  }
  func.func @transform_0(%arg0: i32) -> (i32, i32, i32) {
    %c0_i32 = arith.constant 0 : i32
    %c0_i32_0 = arith.constant 0 : i32
    %c0_i32_1 = arith.constant 0 : i32
    return %arg0, %c0_i32, %c0_i32_0 : i32, i32, i32
  }
  func.func @transform_1(%arg0: i32) -> (i32, i32) {
    %c0_i32 = arith.constant 0 : i32
    %c0_i32_0 = arith.constant 0 : i32
    %c0_i32_1 = arith.constant 0 : i32
    return %c0_i32, %c0_i32_0 : i32, i32
  }
  func.func @transform_2(%arg0: i32) -> (i32, i32) {
    %c0_i32 = arith.constant 0 : i32
    %c0_i32_0 = arith.constant 0 : i32
    %c0_i32_1 = arith.constant 0 : i32
    return %c0_i32, %c0_i32_0 : i32, i32
  }
  func.func @transform_3(%arg0: i32) -> (i32, i32) {
    %c0_i32 = arith.constant 0 : i32
    %c0_i32_0 = arith.constant 0 : i32
    %c0_i32_1 = arith.constant 0 : i32
    return %c0_i32, %c0_i32_0 : i32, i32
  }
  func.func @transform_4(%arg0: i32) -> (i32, i32) {
    %c0_i32 = arith.constant 0 : i32
    %c0_i32_0 = arith.constant 0 : i32
    return %arg0, %c0_i32 : i32, i32
  }
  func.func @transform_5(%arg0: i32) -> (i32, i32) {
    %c0_i32 = arith.constant 0 : i32
    %c0_i32_0 = arith.constant 0 : i32
    return %arg0, %c0_i32 : i32, i32
  }
}

</mosaic_0001>

<bundles_post_ra>
// kernel: tpu_custom_call.1
= control target key start
LH: loop header
LB: loop body
LE: loop exit
PB: predicated region body
PF: predicated region fallthrough
CT: control target
= control target key end

     0   :  { %11 = vsyncpa [#allocation3], 0  ;;  %s1801_s0 = inlined_call_operand.hbm [shape: f32[16,8,32], index: 0, kind: input, shape index: {}]   ;;  %s1802_s1 = inlined_call_operand.vmem [shape: f32[32,32], index: 1, kind: input, shape index: {}]   ;;  %s1803_s2 = inlined_call_operand.vmem [shape: f32[1,32], index: 2, kind: input, shape index: {}]   ;;  %s1804_s3 = inlined_call_operand.vmem [shape: f32[32,1], index: 3, kind: input, shape index: {}]   ;;  %s1805_s4 = inlined_call_operand.hbm [shape: f32[16,32], index: 4, kind: output, shape index: {0}]   ;;  %s1806_s5 = inlined_call_operand.vmem [shape: f32[128,1], index: 5, kind: output, shape index: {1}]  }
   0x1   :  { %12 = vsyncpa [#allocation4], 0  ;;  %s1383_s18 = smov [#allocation2]   ;;  %s1335_s22 = scalar_lea.hbm %s1801_s0, 2048 }
   0x2   :  { %s18_s19 = sshll.u32 %s1383_s18, 4  ;;  %p1336_p0 = scmp.ne.s32.totalorder %s1801_s0, %s1335_s22  ;;  %s19_s19 = int_to_ptr.vmem [resolvable:$true] %s18_s19 }
   0x3   :  { %p1339_p1 = scmp.lt.u32.totalorder %s1335_s22, %s1801_s0 }
   0x5   :  { %p1341_p2 = pnand %p1339_p1, %p1336_p0 }
   0x7   :  { %1344 = shalt.err (!%p1341_p2)
}
   0x8   :  { %s1345_s27 = scalar_lea.vmem %s19_s19, 2048  ;;  %p1350_p4 = scmp.lt.s32.totalorder %s19_s19, %s19_s19 }
   0x9   :  { %p1346_p3 = scmp.ne.s32.totalorder %s19_s19, %s1345_s27  ;;  %p1351_p5 = scmp.lt.s32.totalorder %s1345_s27, %s1345_s27 }
   0xb   :  { %p1352_p6 = por %p1351_p5, %p1350_p4 }
   0xd   :  { %p1353_p7 = pnand %p1352_p6, %p1346_p3 }
   0xf   :  { %1356 = shalt.err (!%p1353_p7)
}
  0x10   :  { %s1384_s28 = smov 128   ;;  %s1385_s29 = smov 8  }
  0x11   :  { %24 = dma.hbm_to_vmem [thread:$0]  %s1801_s0, 2048, %s19_s19, [#allocation3], %s1384_s28, %s1384_s28, %s1385_s29  }
  0x12   :  { %1379 = dma.done.wait [#allocation3], 2048  }
  0x13   :  { %1380 = vsyncadd [#allocation3], 4294965248  ;;  %vm61_vm0 = vcmask 261120   ;;  %v50_v0 = vld [vmem:[%s1802_s1] sm:$0xff]  ;;  %v51_v1 = vld [vmem:[%s1802_s1 + $0x8] sm:$0xff]  ;;  %vm468_vm1 = vcmask 7168  }
  0x14   :  { %v52_v2 = vld [vmem:[%s1802_s1 + $0x10] sm:$0xff]  ;;  %v1212_v3 = vpack.c.bf16 %v51_v1, %v50_v0  ;;  %v53_v4 = vld [vmem:[%s1802_s1 + $0x18] sm:$0xff]  ;;  %v34_v5 = vld [vmem:[#allocation2] sm:$0xff]  ;;  %vm1029_vm2 = vcmask 1041409   ;;  %vm1031_vm3 = vcmask 1042434   ;;  %vm1033_vm4 = vcmask 1043459  }
  0x15   :  { %v1216_v6 = vpack.c.bf16 %v53_v4, %v52_v2  ;;  %1156 = vmatprep.mubr.msk.f32.mxu0 %vm61_vm0, %v34_v5  ;;  %v1446_v7 = vld [vmem:[#allocation2 + $0x8] sm:$0xff]  ;;  %v36_v8 = vld [vmem:[#allocation2 + $0x10] sm:$0xff]  ;;  %v37_v9 = vld [vmem:[#allocation2 + $0x18] sm:$0xff]  ;;  %vm1035_vm5 = vcmask 1044484   ;;  %vm1037_vm6 = vcmask 1045509   ;;  %vm1039_vm7 = vcmask 1046534  }
  0x16   :  { %1213 = vmatprep.subr.bf16.mxu0 %v1212_v3  ;;  %v38_v10 = vld [vmem:[#allocation2 + $0x20] sm:$0xff]  ;;  %v39_v11 = vld [vmem:[#allocation2 + $0x28] sm:$0xff]  ;;  %v40_v12 = vld [vmem:[#allocation2 + $0x30] sm:$0xff]  ;;  %vm1041_vm8 = vcmask 1047559  }
  0x17   :  { %1215 = vmatpush3.bf16.msra.mxu0 %v1212_v3  ;;  %v41_v13 = vld [vmem:[#allocation2 + $0x38] sm:$0xff]  ;;  %v42_v14 = vld [vmem:[#allocation2 + $0x40] sm:$0xff]  ;;  %v1457_v15 = vld [vmem:[#allocation2 + $0x48] sm:$0xff] }
  0x18   :  { %1217 = vmatprep.subr.bf16.mxu0 %v1216_v6  ;;  %v44_v16 = vld [vmem:[#allocation2 + $0x50] sm:$0xff]  ;;  %v45_v17 = vld [vmem:[#allocation2 + $0x58] sm:$0xff]  ;;  %v46_v18 = vld [vmem:[#allocation2 + $0x60] sm:$0xff] }
  0x19   :  { %v47_v19 = vld [vmem:[#allocation2 + $0x68] sm:$0xff]  ;;  %v48_v20 = vld [vmem:[#allocation2 + $0x70] sm:$0xff]  ;;  %v49_v21 = vld [vmem:[#allocation2 + $0x78] sm:$0xff] }
  0x1a   :  { %v271_v22 = vld [vmem:[%s1804_s3] sm:$0xff]  ;;  %v272_v23 = vld [vmem:[%s1804_s3 + $0x8] sm:$0xff]  ;;  %v273_v25 = vld [vmem:[%s1804_s3 + $0x10] sm:$0xff] }
  0x1b   :  { %1219 = vmatpush3.bf16.msra.mxu0 %v1216_v6  ;;  %v1220_v24 = vpack.c.bf16 %v272_v23, %v271_v22  ;;  %v274_v26 = vld [vmem:[%s1804_s3 + $0x18] sm:$0xff]  ;;  %v1482_v28 = vld [vmem:[%s1803_s2] ss:$0 sm:$0xff] }
  0x1c   :  { %v1224_v27 = vpack.c.bf16 %v274_v26, %v273_v25 }
  0x1d   :  { %1221 = vmatprep.subr.bf16.mxu1 %v1220_v24 }
  0x1e   :  { %1157 = vmatmul.mubr.msk.f32.vlgmr.msra.gmra.mrb[0].mxu0 %vm61_vm0, %v1446_v7  ;;  %1223 = vmatpush3.bf16.msra.mxu1 %v1220_v24 }
  0x1f   :  { %1159 = vmatprep.mubr.msk.f32.mxu0 %vm61_vm0, %v36_v8  ;;  %1225 = vmatprep.subr.bf16.mxu1 %v1224_v27 }
  0x22   :  { %1160 = vmatmul.mubr.msk.f32.gmra.mrb[2].mxu0 %vm61_vm0, %v37_v9  ;;  %1227 = vmatpush3.bf16.msra.mxu1 %v1224_v27 }
  0x23   :  { %1162 = vmatprep.mubr.msk.f32.mxu0 %vm61_vm0, %v38_v10 }
  0x26   :  { %1163 = vmatmul.mubr.msk.f32.gmra.mrb[4].mxu0 %vm61_vm0, %v39_v11 }
  0x27   :  { %1165 = vmatprep.mubr.msk.f32.mxu0 %vm61_vm0, %v40_v12 }
  0x2a   :  { %1166 = vmatmul.mubr.msk.f32.gmra.mrb[6].mxu0 %vm61_vm0, %v41_v13 }
  0x2b   :  { %1168 = vmatprep.mubr.msk.f32.mxu0 %vm61_vm0, %v42_v14  ;;  %v1386_v14 = vmov 0  }
  0x2c   :  { %1233 = vset.pattern.permute.xlu0 %v1386_v14  ;;  %1234 = vset.pattern.permute.xlu1 %v1386_v14 }
  0x2e   :  { %1169 = vmatmul.mubr.msk.f32.gmra.mrb[8].mxu0 %vm61_vm0, %v1457_v15 }
  0x2f   :  { %1171 = vmatprep.mubr.msk.f32.mxu0 %vm61_vm0, %v44_v16 }
  0x32   :  { %1172 = vmatmul.mubr.msk.f32.gmra.mrb[10].mxu0 %vm61_vm0, %v45_v17 }
  0x33   :  { %1174 = vmatprep.mubr.msk.f32.mxu0 %vm61_vm0, %v46_v18 }
  0x36   :  { %1175 = vmatmul.mubr.msk.f32.gmra.mrb[12].mxu0 %vm61_vm0, %v47_v19 }
  0x37   :  { %1177 = vmatprep.mubr.msk.f32.mxu0 %vm61_vm0, %v48_v20 }
  0x3a   :  { %1178 = vmatmul.mubr.msk.f32.gmra.mrb[14].mxu0 %vm61_vm0, %v49_v21 }
  0xf1   :  { %v1158_v29 = vpop.f32.mrb[0].mxu0 }
  0xf2   :  { %v182_v30 = vadd.f32 %v1158_v29, %v1482_v28  ;;  %v176_v31 = vpop.f32.mrb[1].mxu0 }
  0xf3   :  { %v177_v32 = vadd.f32 %v1482_v28, %v176_v31 }
  0xf5   :  { %1235 = vtanh.f32 %v177_v32  ;;  %v1161_v33 = vpop.f32.mrb[2].mxu0 }
  0xf6   :  { %1237 = vtanh.f32 %v182_v30  ;;  %v192_v34 = vadd.f32 %v1161_v33, %v1482_v28  ;;  %v186_v35 = vpop.f32.mrb[3].mxu0 }
  0xf7   :  { %v187_v36 = vadd.f32 %v1482_v28, %v186_v35 }
  0xf9   :  { %1239 = vtanh.f32 %v187_v36  ;;  %v1164_v37 = vpop.f32.mrb[4].mxu0 }
  0xfa   :  { %1241 = vtanh.f32 %v192_v34  ;;  %v202_v38 = vadd.f32 %v1164_v37, %v1482_v28  ;;  %v196_v39 = vpop.f32.mrb[5].mxu0 }
  0xfb   :  { %v197_v40 = vadd.f32 %v1482_v28, %v196_v39 }
  0xfd   :  { %1243 = vtanh.f32 %v197_v40  ;;  %v1167_v41 = vpop.f32.mrb[6].mxu0 }
  0xfe   :  { %1245 = vtanh.f32 %v202_v38  ;;  %v212_v42 = vadd.f32 %v1167_v41, %v1482_v28  ;;  %v206_v43 = vpop.f32.mrb[7].mxu0 }
  0xff   :  { %v1236_v44 = vpop.eup %1235  ;;  %v207_v45 = vadd.f32 %v1482_v28, %v206_v43 }
 0x100   :  { %v1238_v46 = vpop.eup %1237  ;;  %1188 = vmatprep.mubr.msk.f32.mxu1 %vm61_vm0, %v1236_v44 }
 0x101   :  { %1247 = vtanh.f32 %v207_v45  ;;  %v1170_v47 = vpop.f32.mrb[8].mxu0  ;;  %1189 = vmatmul.mubr.msk.f32.vlgmr.msra.gmra.mrb[0].mxu1 %vm61_vm0, %v1238_v46 }
 0x102   :  { %1249 = vtanh.f32 %v212_v42  ;;  %v222_v48 = vadd.f32 %v1170_v47, %v1482_v28  ;;  %v216_v49 = vpop.f32.mrb[9].mxu0 }
 0x103   :  { %v1240_v50 = vpop.eup %1239  ;;  %v217_v51 = vadd.f32 %v1482_v28, %v216_v49 }
 0x104   :  { %v1242_v52 = vpop.eup %1241  ;;  %1191 = vmatprep.mubr.msk.f32.mxu1 %vm61_vm0, %v1240_v50 }
 0x105   :  { %1251 = vtanh.f32 %v217_v51  ;;  %v1173_v53 = vpop.f32.mrb[10].mxu0  ;;  %1192 = vmatmul.mubr.msk.f32.gmra.mrb[2].mxu1 %vm61_vm0, %v1242_v52 }
 0x106   :  { %1253 = vtanh.f32 %v222_v48  ;;  %v232_v54 = vadd.f32 %v1173_v53, %v1482_v28  ;;  %v226_v55 = vpop.f32.mrb[11].mxu0 }
 0x107   :  { %v1244_v56 = vpop.eup %1243  ;;  %v227_v57 = vadd.f32 %v1482_v28, %v226_v55 }
 0x108   :  { %v1246_v58 = vpop.eup %1245  ;;  %1255 = vtanh.f32 %v232_v54  ;;  %1194 = vmatprep.mubr.msk.f32.mxu1 %vm61_vm0, %v1244_v56 }
 0x109   :  { %1257 = vtanh.f32 %v227_v57  ;;  %v1176_v59 = vpop.f32.mrb[12].mxu0  ;;  %1195 = vmatmul.mubr.msk.f32.gmra.mrb[4].mxu1 %vm61_vm0, %v1246_v58 }
 0x10a   :  { %v242_v60 = vadd.f32 %v1176_v59, %v1482_v28  ;;  %v236_v61 = vpop.f32.mrb[13].mxu0 }
 0x10b   :  { %v1248_v62 = vpop.eup %1247  ;;  %v237_v63 = vadd.f32 %v1482_v28, %v236_v61 }
 0x10c   :  { %v1250_v0 = vpop.eup %1249  ;;  %1259 = vtanh.f32 %v242_v60  ;;  %1197 = vmatprep.mubr.msk.f32.mxu1 %vm61_vm0, %v1248_v62 }
 0x10d   :  { %1261 = vtanh.f32 %v237_v63  ;;  %v1179_v1 = vpop.f32.mrb[14].mxu0  ;;  %1198 = vmatmul.mubr.msk.f32.gmra.mrb[6].mxu1 %vm61_vm0, %v1250_v0 }
 0x10e   :  { %v252_v2 = vadd.f32 %v1179_v1, %v1482_v28  ;;  %v246_v3 = vpop.f32.mrb[15].mxu0 }
 0x10f   :  { %v1252_v4 = vpop.eup %1251  ;;  %v247_v5 = vadd.f32 %v1482_v28, %v246_v3 }
 0x110   :  { %v1254_v6 = vpop.eup %1253  ;;  %1263 = vtanh.f32 %v252_v2  ;;  %1200 = vmatprep.mubr.msk.f32.mxu1 %vm61_vm0, %v1252_v4 }
 0x111   :  { %1265 = vtanh.f32 %v247_v5  ;;  %1201 = vmatmul.mubr.msk.f32.gmra.mrb[8].mxu1 %vm61_vm0, %v1254_v6 }
 0x112   :  { %v1256_v8 = vpop.eup %1255 }
 0x113   :  { %v1258_v9 = vpop.eup %1257 }
 0x114   :  { %1203 = vmatprep.mubr.msk.f32.mxu1 %vm61_vm0, %v1258_v9 }
 0x115   :  { %1204 = vmatmul.mubr.msk.f32.gmra.mrb[10].mxu1 %vm61_vm0, %v1256_v8 }
 0x116   :  { %v1260_v10 = vpop.eup %1259 }
 0x117   :  { %v1262_v11 = vpop.eup %1261 }
 0x118   :  { %1206 = vmatprep.mubr.msk.f32.mxu1 %vm61_vm0, %v1262_v11 }
 0x119   :  { %1207 = vmatmul.mubr.msk.f32.gmra.mrb[12].mxu1 %vm61_vm0, %v1260_v10 }
 0x11a   :  { %v1264_v12 = vpop.eup %1263 }
 0x11b   :  { %v1266_v13 = vpop.eup %1265 }
 0x11c   :  { %1209 = vmatprep.mubr.msk.f32.mxu1 %vm61_vm0, %v1266_v13 }
 0x11d   :  { %1210 = vmatmul.mubr.msk.f32.gmra.mrb[14].mxu1 %vm61_vm0, %v1264_v12 }
 0x1d4   :  { %v1190_v16 = vpop.f32.mrb[0].mxu1 }
 0x1d5   :  { %v476_v17 = vsel %vm468_vm1, %v1190_v16, -inf  ;;  %v389_v18 = vpop.f32.mrb[1].mxu1 }
 0x1d6   :  { %v477_v19 = vrot.slane %v476_v17, 4  ;;  %v469_v20 = vsel %vm468_vm1, %v389_v18, -inf }
 0x1d7   :  { %v470_v21 = vrot.slane %v469_v20, 4 }
 0x1d8   :  { %v478_v22 = vmax.f32 %v476_v17, %v477_v19  ;;  %v1193_v23 = vpop.f32.mrb[2].mxu1 }
 0x1d9   :  { %v471_v24 = vmax.f32 %v469_v20, %v470_v21  ;;  %v490_v25 = vsel %vm468_vm1, %v1193_v23, -inf  ;;  %v399_v26 = vpop.f32.mrb[3].mxu1 }
 0x1da   :  { %v479_v27 = vrot.slane %v478_v22, 2  ;;  %v491_v28 = vrot.slane %v490_v25, 4  ;;  %v483_v29 = vsel %vm468_vm1, %v399_v26, -inf }
 0x1db   :  { %v472_v30 = vrot.slane %v471_v24, 2  ;;  %v484_v31 = vrot.slane %v483_v29, 4 }
 0x1dc   :  { %v480_v32 = vmax.f32 %v478_v22, %v479_v27  ;;  %v492_v33 = vmax.f32 %v490_v25, %v491_v28  ;;  %v1520_v34 = vpop.f32.mrb[4].mxu1 }
 0x1dd   :  { %v473_v35 = vmax.f32 %v471_v24, %v472_v30  ;;  %v485_v36 = vmax.f32 %v483_v29, %v484_v31  ;;  %v504_v37 = vsel %vm468_vm1, %v1520_v34, -inf  ;;  %v1524_v38 = vpop.f32.mrb[5].mxu1 }
 0x1de   :  { %v481_v39 = vrot.slane %v480_v32, 1  ;;  %v493_v40 = vrot.slane %v492_v33, 2  ;;  %v505_v41 = vrot.slane %v504_v37, 4  ;;  %v497_v42 = vsel %vm468_vm1, %v1524_v38, -inf }
 0x1df   :  { %v474_v43 = vrot.slane %v473_v35, 1  ;;  %v486_v44 = vrot.slane %v485_v36, 2  ;;  %v498_v45 = vrot.slane %v497_v42, 4 }
 0x1e0   :  { %v482_v46 = vmax.f32 %v480_v32, %v481_v39  ;;  %v494_v47 = vmax.f32 %v492_v33, %v493_v40  ;;  %v506_v48 = vmax.f32 %v504_v37, %v505_v41  ;;  %v1528_v49 = vpop.f32.mrb[6].mxu1 }
 0x1e1   :  { %v475_v50 = vmax.f32 %v473_v35, %v474_v43  ;;  %v487_v51 = vmax.f32 %v485_v36, %v486_v44  ;;  %v499_v52 = vmax.f32 %v497_v42, %v498_v45  ;;  %v518_v53 = vsel %vm468_vm1, %v1528_v49, -inf  ;;  %v1532_v54 = vpop.f32.mrb[7].mxu1 }
 0x1e2   :  { %v582_v55 = vsub.f32 %v1190_v16, %v482_v46  ;;  %v495_v56 = vrot.slane %v494_v47, 1  ;;  %v507_v57 = vrot.slane %v506_v48, 2  ;;  %v519_v58 = vrot.slane %v518_v53, 4 }
 0x1e3   :  { %v581_v59 = vsub.f32 %v389_v18, %v475_v50  ;;  %v488_v60 = vrot.slane %v487_v51, 1  ;;  %v500_v61 = vrot.slane %v499_v52, 2  ;;  %v511_v62 = vsel %vm468_vm1, %v1532_v54, -inf }
 0x1e4   :  { %v599_v63 = vmul.f32 1.442695, %v582_v55  ;;  %v496_v0 = vmax.f32 %v494_v47, %v495_v56  ;;  %v508_v1 = vmax.f32 %v506_v48, %v507_v57  ;;  %v520_v2 = vmax.f32 %v518_v53, %v519_v58  ;;  %v1536_v3 = vpop.f32.mrb[8].mxu1 }
 0x1e5   :  { %v597_v4 = vmul.f32 1.442695, %v581_v59  ;;  %v489_v5 = vmax.f32 %v487_v51, %v488_v60  ;;  %v501_v6 = vmax.f32 %v499_v52, %v500_v61  ;;  %v512_v8 = vrot.slane %v511_v62, 4  ;;  %v1538_v9 = vpop.f32.mrb[9].mxu1 }
 0x1e6   :  { %1267 = vpow2.f32 %v599_v63  ;;  %v584_v10 = vsub.f32 %v1193_v23, %v496_v0  ;;  %v509_v11 = vrot.slane %v508_v1, 1  ;;  %v521_v12 = vrot.slane %v520_v2, 2 }
 0x1e7   :  { %1269 = vpow2.f32 %v597_v4  ;;  %v583_v13 = vsub.f32 %v399_v26, %v489_v5  ;;  %v502_v14 = vrot.slane %v501_v6, 1  ;;  %v513_v16 = vmax.f32 %v511_v62, %v512_v8 }
 0x1e8   :  { %v603_v17 = vmul.f32 1.442695, %v584_v10  ;;  %v510_v18 = vmax.f32 %v508_v1, %v509_v11  ;;  %v522_v19 = vmax.f32 %v520_v2, %v521_v12  ;;  %v532_v20 = vsel %vm468_vm1, %v1536_v3, -inf  ;;  %v1542_v21 = vpop.f32.mrb[10].mxu1 }
 0x1e9   :  { %v601_v22 = vmul.f32 1.442695, %v583_v13  ;;  %v503_v24 = vmax.f32 %v501_v6, %v502_v14  ;;  %v514_v25 = vrot.slane %v513_v16, 2  ;;  %v533_v27 = vrot.slane %v532_v20, 4  ;;  %v1544_v28 = vpop.f32.mrb[11].mxu1 }
 0x1ea   :  { %1271 = vpow2.f32 %v603_v17  ;;  %v586_v23 = vsub.f32 %v1520_v34, %v510_v18  ;;  %v523_v26 = vrot.slane %v522_v19, 1  ;;  %v525_v29 = vsel %vm468_vm1, %v1538_v9, -inf }
 0x1eb   :  { %1273 = vpow2.f32 %v601_v22  ;;  %v585_v30 = vsub.f32 %v1524_v38, %v503_v24  ;;  %v515_v31 = vmax.f32 %v513_v16, %v514_v25  ;;  %v534_v32 = vmax.f32 %v532_v20, %v533_v27 }
 0x1ec   :  { %v607_v33 = vmul.f32 1.442695, %v586_v23  ;;  %v524_v35 = vmax.f32 %v522_v19, %v523_v26  ;;  %v526_v36 = vrot.slane %v525_v29, 4  ;;  %v546_v37 = vsel %vm468_vm1, %v1542_v21, -inf  ;;  %v1552_v39 = vpop.f32.mrb[12].mxu1 }
 0x1ed   :  { %v605_v40 = vmul.f32 1.442695, %v585_v30  ;;  %v516_v41 = vrot.slane %v515_v31, 1  ;;  %v535_v34 = vrot.slane %v534_v32, 2  ;;  %v547_v42 = vrot.slane %v546_v37, 4  ;;  %v1554_v43 = vpop.f32.mrb[13].mxu1 }
 0x1ee   :  { %1275 = vpow2.f32 %v607_v33  ;;  %v588_v44 = vsub.f32 %v1528_v49, %v524_v35  ;;  %v527_v38 = vmax.f32 %v525_v29, %v526_v36  ;;  %v539_v45 = vsel %vm468_vm1, %v1544_v28, -inf }
 0x1ef   :  { %1277 = vpow2.f32 %v605_v40  ;;  %v517_v46 = vmax.f32 %v515_v31, %v516_v41  ;;  %v536_v47 = vmax.f32 %v534_v32, %v535_v34  ;;  %v548_v48 = vmax.f32 %v546_v37, %v547_v42 }
 0x1f0   :  { %v1559_v50 = vpop.eup %1267  ;;  %v611_v51 = vmul.f32 1.442695, %v588_v44  ;;  %v528_v52 = vrot.slane %v527_v38, 2  ;;  %v540_v53 = vrot.slane %v539_v45, 4  ;;  %v560_v55 = vsel %vm468_vm1, %v1552_v39, -inf  ;;  %v1563_v56 = vpop.f32.mrb[14].mxu1 }
 0x1f1   :  { %v1565_v57 = vpop.eup %1269  ;;  %v636_v49 = vsel %vm468_vm1, %v1559_v50, 0.0  ;;  %v587_v58 = vsub.f32 %v1532_v54, %v517_v46  ;;  %v537_v59 = vrot.slane %v536_v47, 1  ;;  %v549_v60 = vrot.slane %v548_v48, 2  ;;  %v1570_v61 = vpop.f32.mrb[15].mxu1 }
 0x1f2   :  { %v637_v62 = vrot.slane %v636_v49, 4  ;;  %v629_v63 = vsel %vm468_vm1, %v1565_v57, 0.0  ;;  %1279 = vpow2.f32 %v611_v51  ;;  %v529_v0 = vmax.f32 %v527_v38, %v528_v52 }
 0x1f3   :  { %v630_v1 = vrot.slane %v629_v63, 4  ;;  %v609_v2 = vmul.f32 1.442695, %v587_v58  ;;  %v538_v4 = vmax.f32 %v536_v47, %v537_v59  ;;  %v550_v5 = vmax.f32 %v548_v48, %v549_v60 }
 0x1f4   :  { %v1574_v6 = vpop.eup %1271  ;;  %v1576_v8 = vadd.f32 %v637_v62, %v636_v49  ;;  %v530_v10 = vrot.slane %v529_v0, 1  ;;  %v541_v54 = vmax.f32 %v539_v45, %v540_v53  ;;  %v561_v11 = vrot.slane %v560_v55, 4 }
 0x1f5   :  { %v1578_v12 = vpop.eup %1273  ;;  %v631_v13 = vadd.f32 %v630_v1, %v629_v63  ;;  %v650_v14 = vsel %vm468_vm1, %v1574_v6, 0.0  ;;  %1281 = vpow2.f32 %v609_v2  ;;  %v590_v16 = vsub.f32 %v1536_v3, %v538_v4 }
 0x1f6   :  { %v639_v17 = vrot.slane %v1576_v8, 2  ;;  %v651_v18 = vrot.slane %v650_v14, 4  ;;  %v643_v19 = vsel %vm468_vm1, %v1578_v12, 0.0  ;;  %v531_v20 = vmax.f32 %v529_v0, %v530_v10 }
 0x1f7   :  { %v632_v22 = vrot.slane %v631_v13, 2  ;;  %v644_v24 = vrot.slane %v643_v19, 4  ;;  %v615_v25 = vmul.f32 1.442695, %v590_v16  ;;  %v551_v27 = vrot.slane %v550_v5, 1 }
 0x1f8   :  { %v1586_v23 = vpop.eup %1275  ;;  %v652_v26 = vadd.f32 %v651_v18, %v650_v14  ;;  %v589_v29 = vsub.f32 %v1538_v9, %v531_v20  ;;  %v542_v30 = vrot.slane %v541_v54, 2  ;;  %v562_v31 = vmax.f32 %v560_v55, %v561_v11 }
 0x1f9   :  { %v1589_v32 = vpop.eup %1277  ;;  %v1591_v3 = vadd.f32 %v632_v22, %v631_v13  ;;  %v645_v33 = vadd.f32 %v644_v24, %v643_v19  ;;  %v664_v35 = vsel %vm468_vm1, %v1586_v23, 0.0  ;;  %1283 = vpow2.f32 %v615_v25 }
 0x1fa   :  { %v653_v36 = vrot.slane %v652_v26, 2  ;;  %v665_v37 = vrot.slane %v664_v35, 4  ;;  %v657_v40 = vsel %vm468_vm1, %v1589_v32, 0.0  ;;  %v613_v41 = vmul.f32 1.442695, %v589_v29 }
 0x1fb   :  { %v646_v34 = vrot.slane %v645_v33, 2  ;;  %v658_v42 = vrot.slane %v657_v40, 4  ;;  %v552_v9 = vmax.f32 %v550_v5, %v551_v27  ;;  %v543_v44 = vmax.f32 %v541_v54, %v542_v30 }
 0x1fc   :  { %v1597_v38 = vpop.eup %1279  ;;  %v1599_v45 = vadd.f32 %v653_v36, %v652_v26  ;;  %v666_v46 = vadd.f32 %v665_v37, %v664_v35  ;;  %1285 = vpow2.f32 %v613_v41  ;;  %v563_v47 = vrot.slane %v562_v31, 2 }
 0x1fd   :  { %v1601_v48 = vadd.f32 %v646_v34, %v645_v33  ;;  %v659_v51 = vadd.f32 %v658_v42, %v657_v40  ;;  %v678_v52 = vsel %vm468_vm1, %v1597_v38, 0.0  ;;  %v592_v53 = vsub.f32 %v1542_v21, %v552_v9 }
 0x1fe   :  { %v667_v55 = vrot.slane %v666_v46, 2  ;;  %v679_v49 = vrot.slane %v678_v52, 4  ;;  %v544_v58 = vrot.slane %v543_v44, 1  ;;  %v564_v59 = vmax.f32 %v562_v31, %v563_v47 }
 0x1ff   :  { %v1606_v60 = vpop.eup %1281  ;;  %v660_v62 = vrot.slane %v659_v51, 2  ;;  %v619_v63 = vmul.f32 1.442695, %v592_v53  ;;  %v553_v0 = vsel %vm468_vm1, %v1554_v43, -inf  ;;  %v574_v1 = vsel %vm468_vm1, %v1563_v56, -inf }
 0x200   :  { %v1612_v2 = vadd.f32 %v667_v55, %v666_v46  ;;  %v680_v4 = vadd.f32 %v679_v49, %v678_v52  ;;  %v671_v21 = vsel %vm468_vm1, %v1606_v60, 0.0  ;;  %v545_v5 = vmax.f32 %v543_v44, %v544_v58 }
 0x201   :  { %v1616_v10 = vadd.f32 %v660_v62, %v659_v51  ;;  %v672_v54 = vrot.slane %v671_v21, 4  ;;  %1287 = vpow2.f32 %v619_v63  ;;  %v565_v11 = vrot.slane %v564_v59, 1 }
 0x202   :  { %v681_v13 = vrot.slane %v680_v4, 2  ;;  %v591_v14 = vsub.f32 %v1544_v28, %v545_v5  ;;  %v554_v16 = vrot.slane %v553_v0, 4  ;;  %v575_v18 = vrot.slane %v574_v1, 4 }
 0x203   :  { %v1619_v19 = vpop.eup %1283  ;;  %v673_v20 = vadd.f32 %v672_v54, %v671_v21  ;;  %v566_v22 = vmax.f32 %v564_v59, %v565_v11  ;;  %v567_v24 = vsel %vm468_vm1, %v1570_v61, -inf  ;;  %v640_v25 = vadd.f32 %v639_v17, %v1576_v8 }
 0x204   :  { %v1624_v27 = vadd.f32 %v681_v13, %v680_v4  ;;  %v692_v26 = vsel %vm468_vm1, %v1619_v19, 0.0  ;;  %v617_v29 = vmul.f32 1.442695, %v591_v14  ;;  %v555_v30 = vmax.f32 %v553_v0, %v554_v16 }
 0x205   :  { %v674_v31 = vrot.slane %v673_v20, 2  ;;  %v693_v28 = vrot.slane %v692_v26, 4  ;;  %v594_v33 = vsub.f32 %v1552_v39, %v566_v22  ;;  %v576_v35 = vmax.f32 %v574_v1, %v575_v18 }
 0x206   :  { %v1629_v36 = vpop.eup %1285  ;;  %1289 = vpow2.f32 %v617_v29  ;;  %v556_v37 = vrot.slane %v555_v30, 2  ;;  %v568_v40 = vrot.slane %v567_v24, 4  ;;  %v641_v41 = vrot.slane %v640_v25, 1 }
 0x207   :  { %v1631_v34 = vadd.f32 %v674_v31, %v673_v20  ;;  %v694_v8 = vadd.f32 %v693_v28, %v692_v26  ;;  %v685_v17 = vsel %vm468_vm1, %v1629_v36, 0.0  ;;  %v623_v42 = vmul.f32 1.442695, %v594_v33 }
 0x208   :  { %v686_v9 = vrot.slane %v685_v17, 4  ;;  %v557_v44 = vmax.f32 %v555_v30, %v556_v37  ;;  %v577_v46 = vrot.slane %v576_v35, 2  ;;  %v569_v47 = vmax.f32 %v567_v24, %v568_v40 }
 0x209   :  { %v695_v51 = vrot.slane %v694_v8, 2  ;;  %1291 = vpow2.f32 %v623_v42  ;;  %v642_v39 = vadd.f32 %v641_v41, %v640_v25  ;;  %v634_v52 = vrot.slane %v1591_v3, 1 }
 0x20a   :  { %v687_v53 = vadd.f32 %v686_v9, %v685_v17  ;;  %v558_v55 = vrot.slane %v557_v44, 1  ;;  %v578_v49 = vmax.f32 %v576_v35, %v577_v46  ;;  %v570_v58 = vrot.slane %v569_v47, 2 }
 0x20b   :  { %v1636_v59 = vpop.eup %1287  ;;  %1293 = vrcp.f32 %v642_v39  ;;  %v635_v62 = vadd.f32 %v634_v52, %v1591_v3  ;;  %v655_v63 = vrot.slane %v1599_v45, 1  ;;  %v648_v0 = vrot.slane %v1601_v48, 1 }
 0x20c   :  { %v688_v1 = vrot.slane %v687_v53, 2  ;;  %v706_v4 = vsel %vm468_vm1, %v1636_v59, 0.0  ;;  %v559_v21 = vmax.f32 %v557_v44, %v558_v55  ;;  %v579_v5 = vrot.slane %v578_v49, 1 }
 0x20d   :  { %v707_v54 = vrot.slane %v706_v4, 4  ;;  %v571_v11 = vmax.f32 %v569_v47, %v570_v58  ;;  %1295 = vrcp.f32 %v635_v62  ;;  %v656_v13 = vadd.f32 %v655_v63, %v1599_v45 }
 0x20e   :  { %v689_v14 = vadd.f32 %v688_v1, %v687_v53  ;;  %v593_v16 = vsub.f32 %v1554_v43, %v559_v21  ;;  %v580_v18 = vmax.f32 %v578_v49, %v579_v5  ;;  %v649_v3 = vadd.f32 %v648_v0, %v1601_v48 }
 0x20f   :  { %v708_v20 = vadd.f32 %v707_v54, %v706_v4  ;;  %v572_v22 = vrot.slane %v571_v11, 1  ;;  %1297 = vrcp.f32 %v656_v13  ;;  %v669_v24 = vrot.slane %v1612_v2, 1 }
 0x210   :  { %v1647_v25 = vpop.eup %1289  ;;  %v621_v26 = vmul.f32 1.442695, %v593_v16  ;;  %v596_v29 = vsub.f32 %v1563_v56, %v580_v18  ;;  %1299 = vrcp.f32 %v649_v3  ;;  %v696_v30 = vadd.f32 %v695_v51, %v694_v8 }
 0x211   :  { %v709_v31 = vrot.slane %v708_v20, 2  ;;  %v699_v45 = vsel %vm468_vm1, %v1647_v25, 0.0  ;;  %v573_v43 = vmax.f32 %v571_v11, %v572_v22  ;;  %v670_v28 = vadd.f32 %v669_v24, %v1612_v2 }
 0x212   :  { %v700_v48 = vrot.slane %v699_v45, 4  ;;  %1301 = vpow2.f32 %v621_v26  ;;  %v627_v33 = vmul.f32 1.442695, %v596_v29  ;;  %v697_v35 = vrot.slane %v696_v30, 1 }
 0x213   :  { %v1653_v37 = vpop.eup %1291  ;;  %v710_v40 = vadd.f32 %v709_v31, %v708_v20  ;;  %v595_v41 = vsub.f32 %v1570_v61, %v573_v43  ;;  %1303 = vrcp.f32 %v670_v28  ;;  %v662_v56 = vrot.slane %v1616_v10, 1 }
 0x214   :  { %v701_v8 = vadd.f32 %v700_v48, %v699_v45  ;;  %v720_v17 = vsel %vm468_vm1, %v1653_v37, 0.0  ;;  %1305 = vpow2.f32 %v627_v33  ;;  %v698_v42 = vadd.f32 %v697_v35, %v696_v30 }
 0x215   :  { %v1294_v9 = vpop.eup %1293  ;;  %v721_v2 = vrot.slane %v720_v17, 4  ;;  %v625_v44 = vmul.f32 1.442695, %v595_v41  ;;  %v663_v46 = vadd.f32 %v662_v56, %v1616_v10  ;;  %v690_v47 = vrot.slane %v689_v14, 1 }
 0x216   :  { %v702_v51 = vrot.slane %v701_v8, 2  ;;  %v744_v39 = vmul.f32 %v1294_v9, %v1559_v50  ;;  %1307 = vrcp.f32 %v698_v42  ;;  %v676_v61 = vrot.slane %v1631_v34, 1 }
 0x217   :  { %v1296_v52 = vpop.eup %1295  ;;  %v722_v53 = vadd.f32 %v721_v2, %v720_v17  ;;  %1309 = vpow2.f32 %v625_v44  ;;  %v691_v55 = vadd.f32 %v690_v47, %v689_v14  ;;  %v711_v49 = vrot.slane %v710_v40, 1 }
 0x218   :  { %v703_v58 = vadd.f32 %v702_v51, %v701_v8  ;;  %812 = vperm.xlu0 %1233, %v744_v39   ;;  %774 = vst.msk [vmem:[%s1806_s5 + $0x8] sm:$0xff] %vm468_vm1, %v744_v39  ;;  %v742_v10 = vmul.f32 %v1296_v52, %v1565_v57  ;;  %1311 = vrcp.f32 %v663_v46  ;;  %v677_v50 = vadd.f32 %v676_v61, %v1631_v34 }
 0x219   :  { %v1298_v62 = vpop.eup %1297  ;;  %v723_v63 = vrot.slane %v722_v53, 2  ;;  %1313 = vrcp.f32 %v691_v55  ;;  %v712_v0 = vadd.f32 %v711_v49, %v710_v40  ;;  %v683_v1 = vrot.slane %v1624_v27, 1 }
 0x21a   :  { %v1300_v4 = vpop.eup %1299  ;;  %773 = vst.msk [vmem:[%s1806_s5] sm:$0xff] %vm468_vm1, %v742_v10  ;;  %v748_v21 = vmul.f32 %v1298_v62, %v1574_v6  ;;  %1315 = vrcp.f32 %v677_v50  ;;  %v704_v5 = vrot.slane %v703_v58, 1 }
 0x21b   :  { %v724_v57 = vadd.f32 %v723_v63, %v722_v53  ;;  %v746_v54 = vmul.f32 %v1300_v4, %v1578_v12  ;;  %1317 = vrcp.f32 %v712_v0  ;;  %v684_v34 = vadd.f32 %v683_v1, %v1624_v27  ;;  %v1331_v1 = vld [vmem:[#allocation2] sm:$0xff] }
 0x21c   :  { %v1676_v11 = vpop.eup %1301  ;;  %807 = vperm.xlu0 %1233, %v742_v10   ;;  %776 = vst.msk [vmem:[%s1806_s5 + $0x18] sm:$0xff] %vm468_vm1, %v748_v21  ;;  %v705_v13 = vadd.f32 %v704_v5, %v703_v58 }
 0x21d   :  { %v1304_v14 = vpop.eup %1303  ;;  %v713_v6 = vsel %vm468_vm1, %v1676_v11, 0.0  ;;  %775 = vst.msk [vmem:[%s1806_s5 + $0x10] sm:$0xff] %vm468_vm1, %v746_v54  ;;  %1319 = vrcp.f32 %v684_v34  ;;  %v725_v12 = vrot.slane %v724_v57, 1  ;;  %v1332_v34 = vld [vmem:[#allocation2 + $0x18] sm:$0xff] }
 0x21e   :  { %v1688_v27 = vpop.eup %1305  ;;  %v714_v16 = vrot.slane %v713_v6, 4  ;;  %v752_v18 = vmul.f32 %v1304_v14, %v1586_v23  ;;  %1321 = vrcp.f32 %v705_v13 }
 0x21f   :  { %v734_v3 = vsel %vm468_vm1, %v1688_v27, 0.0  ;;  %v726_v20 = vadd.f32 %v725_v12, %v724_v57 }
 0x220   :  { %v1308_v22 = vpop.eup %1307  ;;  %v715_v24 = vadd.f32 %v714_v16, %v713_v6  ;;  %v735_v26 = vrot.slane %v734_v3, 4  ;;  %822 = vperm.xlu0 %1233, %v748_v21   ;;  %778 = vst.msk [vmem:[%s1806_s5 + $0x28] sm:$0xff] %vm468_vm1, %v752_v18 }
 0x221   :  { %v1310_v29 = vpop.eup %1309  ;;  %v760_v30 = vmul.f32 %v1308_v22, %v1619_v19  ;;  %1323 = vrcp.f32 %v726_v20  ;;  %v797_v22 = vld [vmem:[#allocation2 + $0x40] sm:$0xff] }
 0x222   :  { %v1312_v31 = vpop.eup %1311  ;;  %v716_v23 = vrot.slane %v715_v24, 2  ;;  %v736_v45 = vadd.f32 %v735_v26, %v734_v3  ;;  %v727_v43 = vsel %vm468_vm1, %v1310_v29, 0.0  ;;  %v1333_v3 = vld [vmem:[#allocation2 + $0x10] sm:$0xff] }
 0x223   :  { %v1314_v28 = vpop.eup %1313  ;;  %v728_v48 = vrot.slane %v727_v43, 4  ;;  %852 = vperm.xlu1 %1234, %v760_v30   ;;  %782 = vst.msk [vmem:[%s1806_s5 + $0x48] sm:$0xff] %vm468_vm1, %v760_v30  ;;  %v750_v33 = vmul.f32 %v1312_v31, %v1589_v32 }
 0x224   :  { %v1316_v35 = vpop.eup %1315  ;;  %v717_v40 = vadd.f32 %v716_v23, %v715_v24  ;;  %v737_v41 = vrot.slane %v736_v45, 2  ;;  %817 = vperm.xlu0 %1233, %v746_v54   ;;  %v758_v19 = vmul.f32 %v1314_v28, %v1629_v36 }
 0x225   :  { %v1318_v56 = vpop.eup %1317  ;;  %v729_v8 = vadd.f32 %v728_v48, %v727_v43  ;;  %777 = vst.msk [vmem:[%s1806_s5 + $0x20] sm:$0xff] %vm468_vm1, %v750_v33  ;;  %v754_v17 = vmul.f32 %v1316_v35, %v1606_v60 }
 0x226   :  { %v738_v42 = vadd.f32 %v737_v41, %v736_v45  ;;  %781 = vst.msk [vmem:[%s1806_s5 + $0x40] sm:$0xff] %vm468_vm1, %v758_v19  ;;  %v764_v32 = vmul.f32 %v1318_v56, %v1636_v59  ;;  %v718_v9 = vrot.slane %v717_v40, 1 }
 0x227   :  { %v1320_v2 = vpop.eup %1319  ;;  %v730_v36 = vrot.slane %v729_v8, 2  ;;  %847 = vperm.xlu1 %1234, %v758_v19   ;;  %779 = vst.msk [vmem:[%s1806_s5 + $0x30] sm:$0xff] %vm468_vm1, %v754_v17  ;;  %v793_v19 = vld [vmem:[#allocation2 + $0x20] sm:$0xff] }
 0x228   :  { %v1322_v44 = vpop.eup %1321  ;;  %832 = vperm.xlu0 %1233, %v752_v18   ;;  %784 = vst.msk [vmem:[%s1806_s5 + $0x58] sm:$0xff] %vm468_vm1, %v764_v32  ;;  %v756_v60 = vmul.f32 %v1320_v2, %v1597_v38  ;;  %v719_v46 = vadd.f32 %v718_v9, %v717_v40  ;;  %v739_v59 = vrot.slane %v738_v42, 1 }
 0x229   :  { %v731_v47 = vadd.f32 %v730_v36, %v729_v8  ;;  %v762_v51 = vmul.f32 %v1322_v44, %v1647_v25  ;;  %v800_v8 = vld [vmem:[#allocation2 + $0x58] sm:$0xff] }
 0x22a   :  { %780 = vst.msk [vmem:[%s1806_s5 + $0x38] sm:$0xff] %vm468_vm1, %v756_v60  ;;  %1325 = vrcp.f32 %v719_v46  ;;  %v740_v39 = vadd.f32 %v739_v59, %v738_v42 }
 0x22b   :  { %v1324_v61 = vpop.eup %1323  ;;  %862 = vperm.xlu1 %1234, %v764_v32   ;;  %783 = vst.msk [vmem:[%s1806_s5 + $0x50] sm:$0xff] %vm468_vm1, %v762_v51  ;;  %v732_v38 = vrot.slane %v731_v47, 1 }
 0x22c   :  { %827 = vperm.xlu0 %1233, %v750_v33   ;;  %v768_v52 = vmul.f32 %v1324_v61, %v1653_v37  ;;  %1327 = vrcp.f32 %v740_v39  ;;  %v1334_v33 = vld [vmem:[#allocation2 + $0x28] sm:$0xff]  ;;  %v795_v61 = vld [vmem:[#allocation2 + $0x30] sm:$0xff] }
 0x22d   :  { %v733_v25 = vadd.f32 %v732_v38, %v731_v47  ;;  %v799_v38 = vld [vmem:[#allocation2 + $0x50] sm:$0xff] }
 0x22e   :  { %786 = vst.msk [vmem:[%s1806_s5 + $0x68] sm:$0xff] %vm468_vm1, %v768_v52 }
 0x22f   :  { %857 = vperm.xlu1 %1234, %v762_v51   ;;  %1329 = vrcp.f32 %v733_v25 }
 0x230   :  { %837 = vperm.xlu0 %1233, %v754_v17  }
 0x233   :  { %872 = vperm.xlu1 %1234, %v768_v52  }
 0x234   :  { %v1326_v53 = vpop.eup %1325  ;;  %842 = vperm.xlu0 %1233, %v756_v60  }
 0x235   :  { %v766_v55 = vmul.f32 %v1326_v53, %v1676_v11 }
 0x236   :  { %v1328_v49 = vpop.eup %1327 }
 0x237   :  { %867 = vperm.xlu1 %1234, %v766_v55   ;;  %785 = vst.msk [vmem:[%s1806_s5 + $0x60] sm:$0xff] %vm468_vm1, %v766_v55  ;;  %v772_v37 = vmul.f32 %v1328_v49, %v1688_v27 }
 0x239   :  { %v1330_v58 = vpop.eup %1329  ;;  %788 = vst.msk [vmem:[%s1806_s5 + $0x78] sm:$0xff] %vm468_vm1, %v772_v37 }
 0x23a   :  { %v770_v10 = vmul.f32 %v1330_v58, %v1310_v29 }
 0x23c   :  { %877 = vperm.xlu1 %1234, %v770_v10   ;;  %787 = vst.msk [vmem:[%s1806_s5 + $0x70] sm:$0xff] %vm468_vm1, %v770_v10  ;;  %s1387_s5 = smov [#allocation5]  }
 0x23d   :  { %s1059_s26 = sshll.u32 %s1387_s5, 4  ;;  %s1060_s26 = int_to_ptr.vmem [resolvable:$true] %s1059_s26 }
 0x23e   :  { %s1357_s27 = scalar_lea.vmem %s1060_s26, 256  ;;  %p1362_p9 = scmp.lt.s32.totalorder %s1060_s26, %s1060_s26 }
 0x23f   :  { %p1358_p8 = scmp.ne.s32.totalorder %s1060_s26, %s1357_s27  ;;  %p1363_p10 = scmp.lt.s32.totalorder %s1357_s27, %s1357_s27 }
 0x240   :  { %882 = vperm.xlu1 %1234, %v772_v37  }
 0x241   :  { %p1364_p11 = por %p1363_p10, %p1362_p9 }
 0x243   :  { %p1365_p12 = pnand %p1364_p11, %p1358_p8 }
 0x297   :  { %v813_v50 = vpop.permute.xlu0 %812 }
 0x298   :  { %v886_v62 = vmul.f32 %v813_v50, %v1446_v7 }
 0x29a   :  { %v908_v63 = vsel %vm61_vm0, %v886_v62, 0.0 }
 0x29b   :  { %v808_v0 = vpop.permute.xlu0 %807  ;;  %v909_v21 = vrot.slane %v908_v63, 4 }
 0x29c   :  { %v885_v4 = vmul.f32 %v1331_v1, %v808_v0 }
 0x29d   :  { %v910_v13 = vadd.f32 %v909_v21, %v908_v63 }
 0x29e   :  { %v901_v5 = vsel %vm61_vm0, %v885_v4, 0.0 }
 0x29f   :  { %v902_v57 = vrot.slane %v901_v5, 4  ;;  %v823_v54 = vpop.permute.xlu0 %822  ;;  %v911_v24 = vrot.slane %v910_v13, 2 }
 0x2a0   :  { %v888_v11 = vmul.f32 %v1332_v34, %v823_v54 }
 0x2a1   :  { %v903_v14 = vadd.f32 %v902_v57, %v901_v5  ;;  %v912_v40 = vadd.f32 %v911_v24, %v910_v13  ;;  %v796_v57 = vld [vmem:[#allocation2 + $0x38] sm:$0xff] }
 0x2a2   :  { %v922_v6 = vsel %vm61_vm0, %v888_v11, 0.0  ;;  %v853_v12 = vpop.permute.xlu1 %852 }
 0x2a3   :  { %v904_v27 = vrot.slane %v903_v14, 2  ;;  %v923_v16 = vrot.slane %v922_v6, 4  ;;  %v818_v7 = vpop.permute.xlu0 %817  ;;  %v894_v18 = vmul.f32 %v853_v12, %v1457_v15  ;;  %v913_v47 = vrot.slane %v912_v40, 1 }
 0x2a4   :  { %v887_v20 = vmul.f32 %v1333_v3, %v818_v7  ;;  %v802_v7 = vld [vmem:[#allocation2 + $0x68] sm:$0xff] }
 0x2a5   :  { %v924_v26 = vadd.f32 %v923_v16, %v922_v6  ;;  %v964_v29 = vsel %vm61_vm0, %v894_v18, 0.0  ;;  %v905_v23 = vadd.f32 %v904_v27, %v903_v14  ;;  %v914_v4 = vadd.f32 %v913_v47, %v912_v40 }
 0x2a6   :  { %v915_v30 = vsel %vm61_vm0, %v887_v20, 0.0  ;;  %v848_v31 = vpop.permute.xlu1 %847  ;;  %v965_v28 = vrot.slane %v964_v29, 4 }
 0x2a7   :  { %v916_v45 = vrot.slane %v915_v30, 4  ;;  %v833_v43 = vpop.permute.xlu0 %832  ;;  %v893_v48 = vmul.f32 %v848_v31, %v797_v22  ;;  %v925_v41 = vrot.slane %v924_v26, 2  ;;  %v906_v9 = vrot.slane %v905_v23, 1  ;;  %v801_v31 = vld [vmem:[#allocation2 + $0x60] sm:$0xff] }
 0x2a8   :  { %v890_v35 = vmul.f32 %v1334_v33, %v833_v43  ;;  %v966_v44 = vadd.f32 %v965_v28, %v964_v29 }
 0x2a9   :  { %v917_v15 = vadd.f32 %v916_v45, %v915_v30  ;;  %v957_v56 = vsel %vm61_vm0, %v893_v48, 0.0  ;;  %v926_v51 = vadd.f32 %v925_v41, %v924_v26  ;;  %v907_v37 = vadd.f32 %v906_v9, %v905_v23 }
 0x2aa   :  { %v936_v17 = vsel %vm61_vm0, %v890_v35, 0.0  ;;  %v958_v42 = vrot.slane %v957_v56, 4  ;;  %v863_v32 = vpop.permute.xlu1 %862  ;;  %v967_v58 = vrot.slane %v966_v44, 2 }
 0x2ab   :  { %v918_v2 = vrot.slane %v917_v15, 2  ;;  %v937_v36 = vrot.slane %v936_v17, 4  ;;  %v828_v60 = vpop.permute.xlu0 %827  ;;  %v896_v59 = vmul.f32 %v863_v32, %v800_v8  ;;  %v927_v21 = vrot.slane %v926_v51, 1 }
 0x2ac   :  { %v889_v46 = vmul.f32 %v828_v60, %v793_v19  ;;  %v959_v53 = vadd.f32 %v958_v42, %v957_v56  ;;  %v1030_v6 = vsel %vm1029_vm2, %v914_v4, %v907_v37  ;;  %v968_v3 = vadd.f32 %v967_v58, %v966_v44  ;;  %v804_v58 = vld [vmem:[#allocation2 + $0x78] sm:$0xff] }
 0x2ad   :  { %v919_v39 = vadd.f32 %v918_v2, %v917_v15  ;;  %v938_v52 = vadd.f32 %v937_v36, %v936_v17  ;;  %v978_v55 = vsel %vm61_vm0, %v896_v59, 0.0  ;;  %v928_v24 = vadd.f32 %v927_v21, %v926_v51  ;;  %v803_v2 = vld [vmem:[#allocation2 + $0x70] sm:$0xff] }
 0x2ae   :  { %v929_v25 = vsel %vm61_vm0, %v889_v46, 0.0  ;;  %v858_v49 = vpop.permute.xlu1 %857  ;;  %v979_v0 = vrot.slane %v978_v55, 4  ;;  %v960_v34 = vrot.slane %v959_v53, 2  ;;  %v969_v36 = vrot.slane %v968_v3, 1 }
 0x2af   :  { %v930_v10 = vrot.slane %v929_v25, 4  ;;  %v838_v50 = vpop.permute.xlu0 %837  ;;  %v920_v62 = vrot.slane %v919_v39, 1  ;;  %v895_v1 = vmul.f32 %v858_v49, %v799_v38  ;;  %v939_v54 = vrot.slane %v938_v52, 2 }
 0x2b0   :  { %v891_v63 = vmul.f32 %v838_v50, %v795_v61  ;;  %v980_v20 = vadd.f32 %v979_v0, %v978_v55  ;;  %v961_v45 = vadd.f32 %v960_v34, %v959_v53 }
 0x2b1   :  { %v931_v5 = vadd.f32 %v930_v10, %v929_v25  ;;  %v971_v13 = vsel %vm61_vm0, %v895_v1, 0.0  ;;  %v921_v18 = vadd.f32 %v920_v62, %v919_v39  ;;  %v940_v23 = vadd.f32 %v939_v54, %v938_v52 }
 0x2b2   :  { %v943_v11 = vsel %vm61_vm0, %v891_v63, 0.0  ;;  %v873_v14 = vpop.permute.xlu1 %872  ;;  %v972_v30 = vrot.slane %v971_v13, 4  ;;  %v981_v19 = vrot.slane %v980_v20, 2  ;;  %v962_v44 = vrot.slane %v961_v45, 1 }
 0x2b3   :  { %v932_v12 = vrot.slane %v931_v5, 2  ;;  %v944_v27 = vrot.slane %v943_v11, 4  ;;  %v843_v16 = vpop.permute.xlu0 %842  ;;  %v898_v28 = vmul.f32 %v873_v14, %v802_v7  ;;  %v1032_v15 = vsel %vm1031_vm3, %v921_v18, %v1030_v6 }
 0x2b4   :  { %v892_v22 = vmul.f32 %v843_v16, %v796_v57  ;;  %v973_v41 = vadd.f32 %v972_v30, %v971_v13  ;;  %v941_v59 = vrot.slane %v940_v23, 1  ;;  %v1034_v38 = vsel %vm1033_vm4, %v928_v24, %v1032_v15 }
 0x2b5   :  { %v933_v26 = vadd.f32 %v932_v12, %v931_v5  ;;  %v945_v29 = vadd.f32 %v944_v27, %v943_v11  ;;  %v992_v56 = vsel %vm61_vm0, %v898_v28, 0.0  ;;  %v982_v49 = vadd.f32 %v981_v19, %v980_v20 }
 0x2b6   :  { %v950_v43 = vsel %vm61_vm0, %v892_v22, 0.0  ;;  %v868_v48 = vpop.permute.xlu1 %867  ;;  %v974_v9 = vrot.slane %v973_v41, 2  ;;  %v993_v60 = vrot.slane %v992_v56, 4  ;;  %v942_v0 = vadd.f32 %v941_v59, %v940_v23 }
 0x2b7   :  { %v934_v33 = vrot.slane %v933_v26, 1  ;;  %v946_v35 = vrot.slane %v945_v29, 2  ;;  %v951_v40 = vrot.slane %v950_v43, 4  ;;  %v897_v8 = vmul.f32 %v868_v48, %v801_v31 }
 0x2b8   :  { %v975_v39 = vadd.f32 %v974_v9, %v973_v41  ;;  %v994_v52 = vadd.f32 %v993_v60, %v992_v56  ;;  %v970_v57 = vadd.f32 %v969_v36, %v968_v3  ;;  %v963_v54 = vadd.f32 %v962_v44, %v961_v45 }
 0x2b9   :  { %v935_v17 = vadd.f32 %v934_v33, %v933_v26  ;;  %v947_v42 = vadd.f32 %v946_v35, %v945_v29  ;;  %v952_v32 = vadd.f32 %v951_v40, %v950_v43  ;;  %v985_v46 = vsel %vm61_vm0, %v897_v8, 0.0 }
 0x2ba   :  { %v986_v25 = vrot.slane %v985_v46, 4  ;;  %v976_v50 = vrot.slane %v975_v39, 1  ;;  %v995_v4 = vrot.slane %v994_v52, 2  ;;  %v983_v13 = vrot.slane %v982_v49, 1 }
 0x2bb   :  { %v948_v47 = vrot.slane %v947_v42, 1  ;;  %v953_v51 = vrot.slane %v952_v32, 2  ;;  %v878_v61 = vpop.permute.xlu1 %877  ;;  %v1036_v55 = vsel %vm1035_vm5, %v935_v17, %v1034_v38  ;;  %v1043_v29 = vsel %vm1029_vm2, %v970_v57, %v963_v54 }
 0x2bc   :  { %v899_v53 = vmul.f32 %v878_v61, %v803_v2  ;;  %v987_v62 = vadd.f32 %v986_v25, %v985_v46  ;;  %v1038_v12 = vsel %vm1037_vm6, %v942_v0, %v1036_v55  ;;  %v977_v27 = vadd.f32 %v976_v50, %v975_v39 }
 0x2bd   :  { %v954_v37 = vadd.f32 %v953_v51, %v952_v32  ;;  %v949_v10 = vadd.f32 %v948_v47, %v947_v42  ;;  %v996_v20 = vadd.f32 %v995_v4, %v994_v52  ;;  %v984_v43 = vadd.f32 %v983_v13, %v982_v49 }
 0x2be   :  { %v999_v63 = vsel %vm61_vm0, %v899_v53, 0.0  ;;  %v988_v34 = vrot.slane %v987_v62, 2  ;;  %v1044_v23 = vsel %vm1031_vm3, %v977_v27, %v1043_v29 }
 0x2bf   :  { %v955_v1 = vrot.slane %v954_v37, 1  ;;  %v1000_v21 = vrot.slane %v999_v63, 4  ;;  %v883_v5 = vpop.permute.xlu1 %882  ;;  %v1040_v18 = vsel %vm1039_vm7, %v949_v10, %v1038_v12  ;;  %v997_v28 = vrot.slane %v996_v20, 1 }
 0x2c0   :  { %v900_v11 = vmul.f32 %v883_v5, %v804_v58  ;;  %v989_v16 = vadd.f32 %v988_v34, %v987_v62  ;;  %v1045_v35 = vsel %vm1033_vm4, %v984_v43, %v1044_v23 }
 0x2c1   :  { %v956_v14 = vadd.f32 %v955_v1, %v954_v37  ;;  %v1001_v6 = vadd.f32 %v1000_v21, %v999_v63  ;;  %v998_v19 = vadd.f32 %v997_v28, %v996_v20 }
 0x2c2   :  { %v1006_v7 = vsel %vm61_vm0, %v900_v11, 0.0  ;;  %v990_v3 = vrot.slane %v989_v16, 1 }
 0x2c3   :  { %v1002_v22 = vrot.slane %v1001_v6, 2  ;;  %v1007_v24 = vrot.slane %v1006_v7, 4  ;;  %v1042_v26 = vsel %vm1041_vm8, %v956_v14, %v1040_v18 }
 0x2c4   :  { %1052 = vst.msk [vmem:[#allocation5] sm:$0xff] %vm61_vm0, %v1042_v26  ;;  %v991_v45 = vadd.f32 %v990_v3, %v989_v16 }
 0x2c5   :  { %v1003_v30 = vadd.f32 %v1002_v22, %v1001_v6  ;;  %v1008_v31 = vadd.f32 %v1007_v24, %v1006_v7 }
 0x2c6   :  { %v1046_v41 = vsel %vm1035_vm5, %v991_v45, %v1045_v35 }
 0x2c7   :  { %v1004_v48 = vrot.slane %v1003_v30, 1  ;;  %v1009_v33 = vrot.slane %v1008_v31, 2  ;;  %v1047_v17 = vsel %vm1037_vm6, %v998_v19, %v1046_v41 }
 0x2c9   :  { %v1010_v40 = vadd.f32 %v1009_v33, %v1008_v31  ;;  %v1005_v15 = vadd.f32 %v1004_v48, %v1003_v30 }
 0x2cb   :  { %v1011_v56 = vrot.slane %v1010_v40, 1  ;;  %v1048_v42 = vsel %vm1039_vm7, %v1005_v15, %v1047_v17 }
 0x2cd   :  { %v1012_v8 = vadd.f32 %v1011_v56, %v1010_v40 }
 0x2cf   :  { %v1049_v32 = vsel %vm1041_vm8, %v1012_v8, %v1048_v42 }
 0x2d0   :  { %1053 = vst.msk [vmem:[#allocation5 + $0x8] sm:$0xff] %vm61_vm0, %v1049_v32 }
 0x2d1   :  { %1368 = shalt.err (!%p1365_p12)
}
 0x2d2   :  { %s1369_s7 = scalar_lea.hbm %s1805_s4, 256 }
 0x2d3   :  { %p1370_p13 = scmp.ne.s32.totalorder %s1805_s4, %s1369_s7  ;;  %p1373_p0 = scmp.lt.u32.totalorder %s1369_s7, %s1805_s4 }
 0x2d5   :  { %p1375_p1 = pnand %p1373_p0, %p1370_p13 }
 0x2d7   :  { %1378 = shalt.err (!%p1375_p1)
}
 0x2d8   :  { %1065 = dma.vmem_to_hbm [thread:$0]  %s1060_s26, 256, %s1805_s4, [#allocation4], %s1384_s28, %s1384_s28, %s1385_s29  }
 0x2d9   :  { %1381 = dma.done.wait [#allocation4], 256  }
 0x2da   :  { %1382 = vsyncadd [#allocation4], 4294967040 }
 0x2db   :  { %1073 = vsyncpa [#allocation3], 1 }
 0x2dc   :  { %1074 = vsyncpa [#allocation4], 1 }

// kernel: tpu_custom_call.1
= control target key start
LH: loop header
LB: loop body
LE: loop exit
PB: predicated region body
PF: predicated region fallthrough
CT: control target
= control target key end

     0   :  { %11 = vsyncpa [#allocation3], 0  ;;  %s1801_s0 = inlined_call_operand.hbm [shape: f32[16,8,32], index: 0, kind: input, shape index: {}]   ;;  %s1802_s1 = inlined_call_operand.vmem [shape: f32[32,32], index: 1, kind: input, shape index: {}]   ;;  %s1803_s2 = inlined_call_operand.vmem [shape: f32[1,32], index: 2, kind: input, shape index: {}]   ;;  %s1804_s3 = inlined_call_operand.vmem [shape: f32[32,1], index: 3, kind: input, shape index: {}]   ;;  %s1805_s4 = inlined_call_operand.hbm [shape: f32[16,32], index: 4, kind: output, shape index: {0}]   ;;  %s1806_s5 = inlined_call_operand.vmem [shape: f32[128,1], index: 5, kind: output, shape index: {1}]  }
   0x1   :  { %12 = vsyncpa [#allocation4], 0  ;;  %s1383_s18 = smov [#allocation2]   ;;  %s1335_s22 = scalar_lea.hbm %s1801_s0, 2048 }
   0x2   :  { %s18_s19 = sshll.u32 %s1383_s18, 4  ;;  %p1336_p0 = scmp.ne.s32.totalorder %s1801_s0, %s1335_s22  ;;  %s19_s19 = int_to_ptr.vmem [resolvable:$true] %s18_s19 }
   0x3   :  { %p1339_p1 = scmp.lt.u32.totalorder %s1335_s22, %s1801_s0 }
   0x5   :  { %p1341_p2 = pnand %p1339_p1, %p1336_p0 }
   0x7   :  { %1344 = shalt.err (!%p1341_p2)
}
   0x8   :  { %s1345_s27 = scalar_lea.vmem %s19_s19, 2048  ;;  %p1350_p4 = scmp.lt.s32.totalorder %s19_s19, %s19_s19 }
   0x9   :  { %p1346_p3 = scmp.ne.s32.totalorder %s19_s19, %s1345_s27  ;;  %p1351_p5 = scmp.lt.s32.totalorder %s1345_s27, %s1345_s27 }
   0xb   :  { %p1352_p6 = por %p1351_p5, %p1350_p4 }
   0xd   :  { %p1353_p7 = pnand %p1352_p6, %p1346_p3 }
   0xf   :  { %1356 = shalt.err (!%p1353_p7)
}
  0x10   :  { %s1384_s28 = smov 128   ;;  %s1385_s29 = smov 8  }
  0x11   :  { %24 = dma.hbm_to_vmem [thread:$0]  %s1801_s0, 2048, %s19_s19, [#allocation3], %s1384_s28, %s1384_s28, %s1385_s29  }
  0x12   :  { %1379 = dma.done.wait [#allocation3], 2048  }
  0x13   :  { %1380 = vsyncadd [#allocation3], 4294965248  ;;  %vm61_vm0 = vcmask 261120   ;;  %v50_v0 = vld [vmem:[%s1802_s1] sm:$0xff]  ;;  %v51_v1 = vld [vmem:[%s1802_s1 + $0x8] sm:$0xff]  ;;  %vm468_vm1 = vcmask 7168  }
  0x14   :  { %v52_v2 = vld [vmem:[%s1802_s1 + $0x10] sm:$0xff]  ;;  %v1212_v3 = vpack.c.bf16 %v51_v1, %v50_v0  ;;  %v53_v4 = vld [vmem:[%s1802_s1 + $0x18] sm:$0xff]  ;;  %v34_v5 = vld [vmem:[#allocation2] sm:$0xff]  ;;  %vm1029_vm2 = vcmask 1041409   ;;  %vm1031_vm3 = vcmask 1042434   ;;  %vm1033_vm4 = vcmask 1043459  }
  0x15   :  { %v1216_v6 = vpack.c.bf16 %v53_v4, %v52_v2  ;;  %1156 = vmatprep.mubr.msk.f32.mxu0 %vm61_vm0, %v34_v5  ;;  %v1446_v7 = vld [vmem:[#allocation2 + $0x8] sm:$0xff]  ;;  %v36_v8 = vld [vmem:[#allocation2 + $0x10] sm:$0xff]  ;;  %v37_v9 = vld [vmem:[#allocation2 + $0x18] sm:$0xff]  ;;  %vm1035_vm5 = vcmask 1044484   ;;  %vm1037_vm6 = vcmask 1045509   ;;  %vm1039_vm7 = vcmask 1046534  }
  0x16   :  { %1213 = vmatprep.subr.bf16.mxu0 %v1212_v3  ;;  %v38_v10 = vld [vmem:[#allocation2 + $0x20] sm:$0xff]  ;;  %v39_v11 = vld [vmem:[#allocation2 + $0x28] sm:$0xff]  ;;  %v40_v12 = vld [vmem:[#allocation2 + $0x30] sm:$0xff]  ;;  %vm1041_vm8 = vcmask 1047559  }
  0x17   :  { %1215 = vmatpush3.bf16.msra.mxu0 %v1212_v3  ;;  %v41_v13 = vld [vmem:[#allocation2 + $0x38] sm:$0xff]  ;;  %v42_v14 = vld [vmem:[#allocation2 + $0x40] sm:$0xff]  ;;  %v1457_v15 = vld [vmem:[#allocation2 + $0x48] sm:$0xff] }
  0x18   :  { %1217 = vmatprep.subr.bf16.mxu0 %v1216_v6  ;;  %v44_v16 = vld [vmem:[#allocation2 + $0x50] sm:$0xff]  ;;  %v45_v17 = vld [vmem:[#allocation2 + $0x58] sm:$0xff]  ;;  %v46_v18 = vld [vmem:[#allocation2 + $0x60] sm:$0xff] }
  0x19   :  { %v47_v19 = vld [vmem:[#allocation2 + $0x68] sm:$0xff]  ;;  %v48_v20 = vld [vmem:[#allocation2 + $0x70] sm:$0xff]  ;;  %v49_v21 = vld [vmem:[#allocation2 + $0x78] sm:$0xff] }
  0x1a   :  { %v271_v22 = vld [vmem:[%s1804_s3] sm:$0xff]  ;;  %v272_v23 = vld [vmem:[%s1804_s3 + $0x8] sm:$0xff]  ;;  %v273_v25 = vld [vmem:[%s1804_s3 + $0x10] sm:$0xff] }
  0x1b   :  { %1219 = vmatpush3.bf16.msra.mxu0 %v1216_v6  ;;  %v1220_v24 = vpack.c.bf16 %v272_v23, %v271_v22  ;;  %v274_v26 = vld [vmem:[%s1804_s3 + $0x18] sm:$0xff]  ;;  %v1482_v28 = vld [vmem:[%s1803_s2] ss:$0 sm:$0xff] }
  0x1c   :  { %v1224_v27 = vpack.c.bf16 %v274_v26, %v273_v25 }
  0x1d   :  { %1221 = vmatprep.subr.bf16.mxu1 %v1220_v24 }
  0x1e   :  { %1157 = vmatmul.mubr.msk.f32.vlgmr.msra.gmra.mrb[0].mxu0 %vm61_vm0, %v1446_v7  ;;  %1223 = vmatpush3.bf16.msra.mxu1 %v1220_v24 }
  0x1f   :  { %1159 = vmatprep.mubr.msk.f32.mxu0 %vm61_vm0, %v36_v8  ;;  %1225 = vmatprep.subr.bf16.mxu1 %v1224_v27 }
  0x22   :  { %1160 = vmatmul.mubr.msk.f32.gmra.mrb[2].mxu0 %vm61_vm0, %v37_v9  ;;  %1227 = vmatpush3.bf16.msra.mxu1 %v1224_v27 }
  0x23   :  { %1162 = vmatprep.mubr.msk.f32.mxu0 %vm61_vm0, %v38_v10 }
  0x26   :  { %1163 = vmatmul.mubr.msk.f32.gmra.mrb[4].mxu0 %vm61_vm0, %v39_v11 }
  0x27   :  { %1165 = vmatprep.mubr.msk.f32.mxu0 %vm61_vm0, %v40_v12 }
  0x2a   :  { %1166 = vmatmul.mubr.msk.f32.gmra.mrb[6].mxu0 %vm61_vm0, %v41_v13 }
  0x2b   :  { %1168 = vmatprep.mubr.msk.f32.mxu0 %vm61_vm0, %v42_v14  ;;  %v1386_v14 = vmov 0  }
  0x2c   :  { %1233 = vset.pattern.permute.xlu0 %v1386_v14  ;;  %1234 = vset.pattern.permute.xlu1 %v1386_v14 }
  0x2e   :  { %1169 = vmatmul.mubr.msk.f32.gmra.mrb[8].mxu0 %vm61_vm0, %v1457_v15 }
  0x2f   :  { %1171 = vmatprep.mubr.msk.f32.mxu0 %vm61_vm0, %v44_v16 }
  0x32   :  { %1172 = vmatmul.mubr.msk.f32.gmra.mrb[10].mxu0 %vm61_vm0, %v45_v17 }
  0x33   :  { %1174 = vmatprep.mubr.msk.f32.mxu0 %vm61_vm0, %v46_v18 }
  0x36   :  { %1175 = vmatmul.mubr.msk.f32.gmra.mrb[12].mxu0 %vm61_vm0, %v47_v19 }
  0x37   :  { %1177 = vmatprep.mubr.msk.f32.mxu0 %vm61_vm0, %v48_v20 }
  0x3a   :  { %1178 = vmatmul.mubr.msk.f32.gmra.mrb[14].mxu0 %vm61_vm0, %v49_v21 }
  0xf1   :  { %v1158_v29 = vpop.f32.mrb[0].mxu0 }
  0xf2   :  { %v182_v30 = vadd.f32 %v1158_v29, %v1482_v28  ;;  %v176_v31 = vpop.f32.mrb[1].mxu0 }
  0xf3   :  { %v177_v32 = vadd.f32 %v1482_v28, %v176_v31 }
  0xf5   :  { %1235 = vtanh.f32 %v177_v32  ;;  %v1161_v33 = vpop.f32.mrb[2].mxu0 }
  0xf6   :  { %1237 = vtanh.f32 %v182_v30  ;;  %v192_v34 = vadd.f32 %v1161_v33, %v1482_v28  ;;  %v186_v35 = vpop.f32.mrb[3].mxu0 }
  0xf7   :  { %v187_v36 = vadd.f32 %v1482_v28, %v186_v35 }
  0xf9   :  { %1239 = vtanh.f32 %v187_v36  ;;  %v1164_v37 = vpop.f32.mrb[4].mxu0 }
  0xfa   :  { %1241 = vtanh.f32 %v192_v34  ;;  %v202_v38 = vadd.f32 %v1164_v37, %v1482_v28  ;;  %v196_v39 = vpop.f32.mrb[5].mxu0 }
  0xfb   :  { %v197_v40 = vadd.f32 %v1482_v28, %v196_v39 }
  0xfd   :  { %1243 = vtanh.f32 %v197_v40  ;;  %v1167_v41 = vpop.f32.mrb[6].mxu0 }
  0xfe   :  { %1245 = vtanh.f32 %v202_v38  ;;  %v212_v42 = vadd.f32 %v1167_v41, %v1482_v28  ;;  %v206_v43 = vpop.f32.mrb[7].mxu0 }
  0xff   :  { %v1236_v44 = vpop.eup %1235  ;;  %v207_v45 = vadd.f32 %v1482_v28, %v206_v43 }
 0x100   :  { %v1238_v46 = vpop.eup %1237  ;;  %1188 = vmatprep.mubr.msk.f32.mxu1 %vm61_vm0, %v1236_v44 }
 0x101   :  { %1247 = vtanh.f32 %v207_v45  ;;  %v1170_v47 = vpop.f32.mrb[8].mxu0  ;;  %1189 = vmatmul.mubr.msk.f32.vlgmr.msra.gmra.mrb[0].mxu1 %vm61_vm0, %v1238_v46 }
 0x102   :  { %1249 = vtanh.f32 %v212_v42  ;;  %v222_v48 = vadd.f32 %v1170_v47, %v1482_v28  ;;  %v216_v49 = vpop.f32.mrb[9].mxu0 }
 0x103   :  { %v1240_v50 = vpop.eup %1239  ;;  %v217_v51 = vadd.f32 %v1482_v28, %v216_v49 }
 0x104   :  { %v1242_v52 = vpop.eup %1241  ;;  %1191 = vmatprep.mubr.msk.f32.mxu1 %vm61_vm0, %v1240_v50 }
 0x105   :  { %1251 = vtanh.f32 %v217_v51  ;;  %v1173_v53 = vpop.f32.mrb[10].mxu0  ;;  %1192 = vmatmul.mubr.msk.f32.gmra.mrb[2].mxu1 %vm61_vm0, %v1242_v52 }
 0x106   :  { %1253 = vtanh.f32 %v222_v48  ;;  %v232_v54 = vadd.f32 %v1173_v53, %v1482_v28  ;;  %v226_v55 = vpop.f32.mrb[11].mxu0 }
 0x107   :  { %v1244_v56 = vpop.eup %1243  ;;  %v227_v57 = vadd.f32 %v1482_v28, %v226_v55 }
 0x108   :  { %v1246_v58 = vpop.eup %1245  ;;  %1255 = vtanh.f32 %v232_v54  ;;  %1194 = vmatprep.mubr.msk.f32.mxu1 %vm61_vm0, %v1244_v56 }
 0x109   :  { %1257 = vtanh.f32 %v227_v57  ;;  %v1176_v59 = vpop.f32.mrb[12].mxu0  ;;  %1195 = vmatmul.mubr.msk.f32.gmra.mrb[4].mxu1 %vm61_vm0, %v1246_v58 }
 0x10a   :  { %v242_v60 = vadd.f32 %v1176_v59, %v1482_v28  ;;  %v236_v61 = vpop.f32.mrb[13].mxu0 }
 0x10b   :  { %v1248_v62 = vpop.eup %1247  ;;  %v237_v63 = vadd.f32 %v1482_v28, %v236_v61 }
 0x10c   :  { %v1250_v0 = vpop.eup %1249  ;;  %1259 = vtanh.f32 %v242_v60  ;;  %1197 = vmatprep.mubr.msk.f32.mxu1 %vm61_vm0, %v1248_v62 }
 0x10d   :  { %1261 = vtanh.f32 %v237_v63  ;;  %v1179_v1 = vpop.f32.mrb[14].mxu0  ;;  %1198 = vmatmul.mubr.msk.f32.gmra.mrb[6].mxu1 %vm61_vm0, %v1250_v0 }
 0x10e   :  { %v252_v2 = vadd.f32 %v1179_v1, %v1482_v28  ;;  %v246_v3 = vpop.f32.mrb[15].mxu0 }
 0x10f   :  { %v1252_v4 = vpop.eup %1251  ;;  %v247_v5 = vadd.f32 %v1482_v28, %v246_v3 }
 0x110   :  { %v1254_v6 = vpop.eup %1253  ;;  %1263 = vtanh.f32 %v252_v2  ;;  %1200 = vmatprep.mubr.msk.f32.mxu1 %vm61_vm0, %v1252_v4 }
 0x111   :  { %1265 = vtanh.f32 %v247_v5  ;;  %1201 = vmatmul.mubr.msk.f32.gmra.mrb[8].mxu1 %vm61_vm0, %v1254_v6 }
 0x112   :  { %v1256_v8 = vpop.eup %1255 }
 0x113   :  { %v1258_v9 = vpop.eup %1257 }
 0x114   :  { %1203 = vmatprep.mubr.msk.f32.mxu1 %vm61_vm0, %v1258_v9 }
 0x115   :  { %1204 = vmatmul.mubr.msk.f32.gmra.mrb[10].mxu1 %vm61_vm0, %v1256_v8 }
 0x116   :  { %v1260_v10 = vpop.eup %1259 }
 0x117   :  { %v1262_v11 = vpop.eup %1261 }
 0x118   :  { %1206 = vmatprep.mubr.msk.f32.mxu1 %vm61_vm0, %v1262_v11 }
 0x119   :  { %1207 = vmatmul.mubr.msk.f32.gmra.mrb[12].mxu1 %vm61_vm0, %v1260_v10 }
 0x11a   :  { %v1264_v12 = vpop.eup %1263 }
 0x11b   :  { %v1266_v13 = vpop.eup %1265 }
 0x11c   :  { %1209 = vmatprep.mubr.msk.f32.mxu1 %vm61_vm0, %v1266_v13 }
 0x11d   :  { %1210 = vmatmul.mubr.msk.f32.gmra.mrb[14].mxu1 %vm61_vm0, %v1264_v12 }
 0x1d4   :  { %v1190_v16 = vpop.f32.mrb[0].mxu1 }
 0x1d5   :  { %v476_v17 = vsel %vm468_vm1, %v1190_v16, -inf  ;;  %v389_v18 = vpop.f32.mrb[1].mxu1 }
 0x1d6   :  { %v477_v19 = vrot.slane %v476_v17, 4  ;;  %v469_v20 = vsel %vm468_vm1, %v389_v18, -inf }
 0x1d7   :  { %v470_v21 = vrot.slane %v469_v20, 4 }
 0x1d8   :  { %v478_v22 = vmax.f32 %v476_v17, %v477_v19  ;;  %v1193_v23 = vpop.f32.mrb[2].mxu1 }
 0x1d9   :  { %v471_v24 = vmax.f32 %v469_v20, %v470_v21  ;;  %v490_v25 = vsel %vm468_vm1, %v1193_v23, -inf  ;;  %v399_v26 = vpop.f32.mrb[3].mxu1 }
 0x1da   :  { %v479_v27 = vrot.slane %v478_v22, 2  ;;  %v491_v28 = vrot.slane %v490_v25, 4  ;;  %v483_v29 = vsel %vm468_vm1, %v399_v26, -inf }
 0x1db   :  { %v472_v30 = vrot.slane %v471_v24, 2  ;;  %v484_v31 = vrot.slane %v483_v29, 4 }
 0x1dc   :  { %v480_v32 = vmax.f32 %v478_v22, %v479_v27  ;;  %v492_v33 = vmax.f32 %v490_v25, %v491_v28  ;;  %v1520_v34 = vpop.f32.mrb[4].mxu1 }
 0x1dd   :  { %v473_v35 = vmax.f32 %v471_v24, %v472_v30  ;;  %v485_v36 = vmax.f32 %v483_v29, %v484_v31  ;;  %v504_v37 = vsel %vm468_vm1, %v1520_v34, -inf  ;;  %v1524_v38 = vpop.f32.mrb[5].mxu1 }
 0x1de   :  { %v481_v39 = vrot.slane %v480_v32, 1  ;;  %v493_v40 = vrot.slane %v492_v33, 2  ;;  %v505_v41 = vrot.slane %v504_v37, 4  ;;  %v497_v42 = vsel %vm468_vm1, %v1524_v38, -inf }
 0x1df   :  { %v474_v43 = vrot.slane %v473_v35, 1  ;;  %v486_v44 = vrot.slane %v485_v36, 2  ;;  %v498_v45 = vrot.slane %v497_v42, 4 }
 0x1e0   :  { %v482_v46 = vmax.f32 %v480_v32, %v481_v39  ;;  %v494_v47 = vmax.f32 %v492_v33, %v493_v40  ;;  %v506_v48 = vmax.f32 %v504_v37, %v505_v41  ;;  %v1528_v49 = vpop.f32.mrb[6].mxu1 }
 0x1e1   :  { %v475_v50 = vmax.f32 %v473_v35, %v474_v43  ;;  %v487_v51 = vmax.f32 %v485_v36, %v486_v44  ;;  %v499_v52 = vmax.f32 %v497_v42, %v498_v45  ;;  %v518_v53 = vsel %vm468_vm1, %v1528_v49, -inf  ;;  %v1532_v54 = vpop.f32.mrb[7].mxu1 }
 0x1e2   :  { %v582_v55 = vsub.f32 %v1190_v16, %v482_v46  ;;  %v495_v56 = vrot.slane %v494_v47, 1  ;;  %v507_v57 = vrot.slane %v506_v48, 2  ;;  %v519_v58 = vrot.slane %v518_v53, 4 }
 0x1e3   :  { %v581_v59 = vsub.f32 %v389_v18, %v475_v50  ;;  %v488_v60 = vrot.slane %v487_v51, 1  ;;  %v500_v61 = vrot.slane %v499_v52, 2  ;;  %v511_v62 = vsel %vm468_vm1, %v1532_v54, -inf }
 0x1e4   :  { %v599_v63 = vmul.f32 1.442695, %v582_v55  ;;  %v496_v0 = vmax.f32 %v494_v47, %v495_v56  ;;  %v508_v1 = vmax.f32 %v506_v48, %v507_v57  ;;  %v520_v2 = vmax.f32 %v518_v53, %v519_v58  ;;  %v1536_v3 = vpop.f32.mrb[8].mxu1 }
 0x1e5   :  { %v597_v4 = vmul.f32 1.442695, %v581_v59  ;;  %v489_v5 = vmax.f32 %v487_v51, %v488_v60  ;;  %v501_v6 = vmax.f32 %v499_v52, %v500_v61  ;;  %v512_v8 = vrot.slane %v511_v62, 4  ;;  %v1538_v9 = vpop.f32.mrb[9].mxu1 }
 0x1e6   :  { %1267 = vpow2.f32 %v599_v63  ;;  %v584_v10 = vsub.f32 %v1193_v23, %v496_v0  ;;  %v509_v11 = vrot.slane %v508_v1, 1  ;;  %v521_v12 = vrot.slane %v520_v2, 2 }
 0x1e7   :  { %1269 = vpow2.f32 %v597_v4  ;;  %v583_v13 = vsub.f32 %v399_v26, %v489_v5  ;;  %v502_v14 = vrot.slane %v501_v6, 1  ;;  %v513_v16 = vmax.f32 %v511_v62, %v512_v8 }
 0x1e8   :  { %v603_v17 = vmul.f32 1.442695, %v584_v10  ;;  %v510_v18 = vmax.f32 %v508_v1, %v509_v11  ;;  %v522_v19 = vmax.f32 %v520_v2, %v521_v12  ;;  %v532_v20 = vsel %vm468_vm1, %v1536_v3, -inf  ;;  %v1542_v21 = vpop.f32.mrb[10].mxu1 }
 0x1e9   :  { %v601_v22 = vmul.f32 1.442695, %v583_v13  ;;  %v503_v24 = vmax.f32 %v501_v6, %v502_v14  ;;  %v514_v25 = vrot.slane %v513_v16, 2  ;;  %v533_v27 = vrot.slane %v532_v20, 4  ;;  %v1544_v28 = vpop.f32.mrb[11].mxu1 }
 0x1ea   :  { %1271 = vpow2.f32 %v603_v17  ;;  %v586_v23 = vsub.f32 %v1520_v34, %v510_v18  ;;  %v523_v26 = vrot.slane %v522_v19, 1  ;;  %v525_v29 = vsel %vm468_vm1, %v1538_v9, -inf }
 0x1eb   :  { %1273 = vpow2.f32 %v601_v22  ;;  %v585_v30 = vsub.f32 %v1524_v38, %v503_v24  ;;  %v515_v31 = vmax.f32 %v513_v16, %v514_v25  ;;  %v534_v32 = vmax.f32 %v532_v20, %v533_v27 }
 0x1ec   :  { %v607_v33 = vmul.f32 1.442695, %v586_v23  ;;  %v524_v35 = vmax.f32 %v522_v19, %v523_v26  ;;  %v526_v36 = vrot.slane %v525_v29, 4  ;;  %v546_v37 = vsel %vm468_vm1, %v1542_v21, -inf  ;;  %v1552_v39 = vpop.f32.mrb[12].mxu1 }
 0x1ed   :  { %v605_v40 = vmul.f32 1.442695, %v585_v30  ;;  %v516_v41 = vrot.slane %v515_v31, 1  ;;  %v535_v34 = vrot.slane %v534_v32, 2  ;;  %v547_v42 = vrot.slane %v546_v37, 4  ;;  %v1554_v43 = vpop.f32.mrb[13].mxu1 }
 0x1ee   :  { %1275 = vpow2.f32 %v607_v33  ;;  %v588_v44 = vsub.f32 %v1528_v49, %v524_v35  ;;  %v527_v38 = vmax.f32 %v525_v29, %v526_v36  ;;  %v539_v45 = vsel %vm468_vm1, %v1544_v28, -inf }
 0x1ef   :  { %1277 = vpow2.f32 %v605_v40  ;;  %v517_v46 = vmax.f32 %v515_v31, %v516_v41  ;;  %v536_v47 = vmax.f32 %v534_v32, %v535_v34  ;;  %v548_v48 = vmax.f32 %v546_v37, %v547_v42 }
 0x1f0   :  { %v1559_v50 = vpop.eup %1267  ;;  %v611_v51 = vmul.f32 1.442695, %v588_v44  ;;  %v528_v52 = vrot.slane %v527_v38, 2  ;;  %v540_v53 = vrot.slane %v539_v45, 4  ;;  %v560_v55 = vsel %vm468_vm1, %v1552_v39, -inf  ;;  %v1563_v56 = vpop.f32.mrb[14].mxu1 }
 0x1f1   :  { %v1565_v57 = vpop.eup %1269  ;;  %v636_v49 = vsel %vm468_vm1, %v1559_v50, 0.0  ;;  %v587_v58 = vsub.f32 %v1532_v54, %v517_v46  ;;  %v537_v59 = vrot.slane %v536_v47, 1  ;;  %v549_v60 = vrot.slane %v548_v48, 2  ;;  %v1570_v61 = vpop.f32.mrb[15].mxu1 }
 0x1f2   :  { %v637_v62 = vrot.slane %v636_v49, 4  ;;  %v629_v63 = vsel %vm468_vm1, %v1565_v57, 0.0  ;;  %1279 = vpow2.f32 %v611_v51  ;;  %v529_v0 = vmax.f32 %v527_v38, %v528_v52 }
 0x1f3   :  { %v630_v1 = vrot.slane %v629_v63, 4  ;;  %v609_v2 = vmul.f32 1.442695, %v587_v58  ;;  %v538_v4 = vmax.f32 %v536_v47, %v537_v59  ;;  %v550_v5 = vmax.f32 %v548_v48, %v549_v60 }
 0x1f4   :  { %v1574_v6 = vpop.eup %1271  ;;  %v1576_v8 = vadd.f32 %v637_v62, %v636_v49  ;;  %v530_v10 = vrot.slane %v529_v0, 1  ;;  %v541_v54 = vmax.f32 %v539_v45, %v540_v53  ;;  %v561_v11 = vrot.slane %v560_v55, 4 }
 0x1f5   :  { %v1578_v12 = vpop.eup %1273  ;;  %v631_v13 = vadd.f32 %v630_v1, %v629_v63  ;;  %v650_v14 = vsel %vm468_vm1, %v1574_v6, 0.0  ;;  %1281 = vpow2.f32 %v609_v2  ;;  %v590_v16 = vsub.f32 %v1536_v3, %v538_v4 }
 0x1f6   :  { %v639_v17 = vrot.slane %v1576_v8, 2  ;;  %v651_v18 = vrot.slane %v650_v14, 4  ;;  %v643_v19 = vsel %vm468_vm1, %v1578_v12, 0.0  ;;  %v531_v20 = vmax.f32 %v529_v0, %v530_v10 }
 0x1f7   :  { %v632_v22 = vrot.slane %v631_v13, 2  ;;  %v644_v24 = vrot.slane %v643_v19, 4  ;;  %v615_v25 = vmul.f32 1.442695, %v590_v16  ;;  %v551_v27 = vrot.slane %v550_v5, 1 }
 0x1f8   :  { %v1586_v23 = vpop.eup %1275  ;;  %v652_v26 = vadd.f32 %v651_v18, %v650_v14  ;;  %v589_v29 = vsub.f32 %v1538_v9, %v531_v20  ;;  %v542_v30 = vrot.slane %v541_v54, 2  ;;  %v562_v31 = vmax.f32 %v560_v55, %v561_v11 }
 0x1f9   :  { %v1589_v32 = vpop.eup %1277  ;;  %v1591_v3 = vadd.f32 %v632_v22, %v631_v13  ;;  %v645_v33 = vadd.f32 %v644_v24, %v643_v19  ;;  %v664_v35 = vsel %vm468_vm1, %v1586_v23, 0.0  ;;  %1283 = vpow2.f32 %v615_v25 }
 0x1fa   :  { %v653_v36 = vrot.slane %v652_v26, 2  ;;  %v665_v37 = vrot.slane %v664_v35, 4  ;;  %v657_v40 = vsel %vm468_vm1, %v1589_v32, 0.0  ;;  %v613_v41 = vmul.f32 1.442695, %v589_v29 }
 0x1fb   :  { %v646_v34 = vrot.slane %v645_v33, 2  ;;  %v658_v42 = vrot.slane %v657_v40, 4  ;;  %v552_v9 = vmax.f32 %v550_v5, %v551_v27  ;;  %v543_v44 = vmax.f32 %v541_v54, %v542_v30 }
 0x1fc   :  { %v1597_v38 = vpop.eup %1279  ;;  %v1599_v45 = vadd.f32 %v653_v36, %v652_v26  ;;  %v666_v46 = vadd.f32 %v665_v37, %v664_v35  ;;  %1285 = vpow2.f32 %v613_v41  ;;  %v563_v47 = vrot.slane %v562_v31, 2 }
 0x1fd   :  { %v1601_v48 = vadd.f32 %v646_v34, %v645_v33  ;;  %v659_v51 = vadd.f32 %v658_v42, %v657_v40  ;;  %v678_v52 = vsel %vm468_vm1, %v1597_v38, 0.0  ;;  %v592_v53 = vsub.f32 %v1542_v21, %v552_v9 }
 0x1fe   :  { %v667_v55 = vrot.slane %v666_v46, 2  ;;  %v679_v49 = vrot.slane %v678_v52, 4  ;;  %v544_v58 = vrot.slane %v543_v44, 1  ;;  %v564_v59 = vmax.f32 %v562_v31, %v563_v47 }
 0x1ff   :  { %v1606_v60 = vpop.eup %1281  ;;  %v660_v62 = vrot.slane %v659_v51, 2  ;;  %v619_v63 = vmul.f32 1.442695, %v592_v53  ;;  %v553_v0 = vsel %vm468_vm1, %v1554_v43, -inf  ;;  %v574_v1 = vsel %vm468_vm1, %v1563_v56, -inf }
 0x200   :  { %v1612_v2 = vadd.f32 %v667_v55, %v666_v46  ;;  %v680_v4 = vadd.f32 %v679_v49, %v678_v52  ;;  %v671_v21 = vsel %vm468_vm1, %v1606_v60, 0.0  ;;  %v545_v5 = vmax.f32 %v543_v44, %v544_v58 }
 0x201   :  { %v1616_v10 = vadd.f32 %v660_v62, %v659_v51  ;;  %v672_v54 = vrot.slane %v671_v21, 4  ;;  %1287 = vpow2.f32 %v619_v63  ;;  %v565_v11 = vrot.slane %v564_v59, 1 }
 0x202   :  { %v681_v13 = vrot.slane %v680_v4, 2  ;;  %v591_v14 = vsub.f32 %v1544_v28, %v545_v5  ;;  %v554_v16 = vrot.slane %v553_v0, 4  ;;  %v575_v18 = vrot.slane %v574_v1, 4 }
 0x203   :  { %v1619_v19 = vpop.eup %1283  ;;  %v673_v20 = vadd.f32 %v672_v54, %v671_v21  ;;  %v566_v22 = vmax.f32 %v564_v59, %v565_v11  ;;  %v567_v24 = vsel %vm468_vm1, %v1570_v61, -inf  ;;  %v640_v25 = vadd.f32 %v639_v17, %v1576_v8 }
 0x204   :  { %v1624_v27 = vadd.f32 %v681_v13, %v680_v4  ;;  %v692_v26 = vsel %vm468_vm1, %v1619_v19, 0.0  ;;  %v617_v29 = vmul.f32 1.442695, %v591_v14  ;;  %v555_v30 = vmax.f32 %v553_v0, %v554_v16 }
 0x205   :  { %v674_v31 = vrot.slane %v673_v20, 2  ;;  %v693_v28 = vrot.slane %v692_v26, 4  ;;  %v594_v33 = vsub.f32 %v1552_v39, %v566_v22  ;;  %v576_v35 = vmax.f32 %v574_v1, %v575_v18 }
 0x206   :  { %v1629_v36 = vpop.eup %1285  ;;  %1289 = vpow2.f32 %v617_v29  ;;  %v556_v37 = vrot.slane %v555_v30, 2  ;;  %v568_v40 = vrot.slane %v567_v24, 4  ;;  %v641_v41 = vrot.slane %v640_v25, 1 }
 0x207   :  { %v1631_v34 = vadd.f32 %v674_v31, %v673_v20  ;;  %v694_v8 = vadd.f32 %v693_v28, %v692_v26  ;;  %v685_v17 = vsel %vm468_vm1, %v1629_v36, 0.0  ;;  %v623_v42 = vmul.f32 1.442695, %v594_v33 }
 0x208   :  { %v686_v9 = vrot.slane %v685_v17, 4  ;;  %v557_v44 = vmax.f32 %v555_v30, %v556_v37  ;;  %v577_v46 = vrot.slane %v576_v35, 2  ;;  %v569_v47 = vmax.f32 %v567_v24, %v568_v40 }
 0x209   :  { %v695_v51 = vrot.slane %v694_v8, 2  ;;  %1291 = vpow2.f32 %v623_v42  ;;  %v642_v39 = vadd.f32 %v641_v41, %v640_v25  ;;  %v634_v52 = vrot.slane %v1591_v3, 1 }
 0x20a   :  { %v687_v53 = vadd.f32 %v686_v9, %v685_v17  ;;  %v558_v55 = vrot.slane %v557_v44, 1  ;;  %v578_v49 = vmax.f32 %v576_v35, %v577_v46  ;;  %v570_v58 = vrot.slane %v569_v47, 2 }
 0x20b   :  { %v1636_v59 = vpop.eup %1287  ;;  %1293 = vrcp.f32 %v642_v39  ;;  %v635_v62 = vadd.f32 %v634_v52, %v1591_v3  ;;  %v655_v63 = vrot.slane %v1599_v45, 1  ;;  %v648_v0 = vrot.slane %v1601_v48, 1 }
 0x20c   :  { %v688_v1 = vrot.slane %v687_v53, 2  ;;  %v706_v4 = vsel %vm468_vm1, %v1636_v59, 0.0  ;;  %v559_v21 = vmax.f32 %v557_v44, %v558_v55  ;;  %v579_v5 = vrot.slane %v578_v49, 1 }
 0x20d   :  { %v707_v54 = vrot.slane %v706_v4, 4  ;;  %v571_v11 = vmax.f32 %v569_v47, %v570_v58  ;;  %1295 = vrcp.f32 %v635_v62  ;;  %v656_v13 = vadd.f32 %v655_v63, %v1599_v45 }
 0x20e   :  { %v689_v14 = vadd.f32 %v688_v1, %v687_v53  ;;  %v593_v16 = vsub.f32 %v1554_v43, %v559_v21  ;;  %v580_v18 = vmax.f32 %v578_v49, %v579_v5  ;;  %v649_v3 = vadd.f32 %v648_v0, %v1601_v48 }
 0x20f   :  { %v708_v20 = vadd.f32 %v707_v54, %v706_v4  ;;  %v572_v22 = vrot.slane %v571_v11, 1  ;;  %1297 = vrcp.f32 %v656_v13  ;;  %v669_v24 = vrot.slane %v1612_v2, 1 }
 0x210   :  { %v1647_v25 = vpop.eup %1289  ;;  %v621_v26 = vmul.f32 1.442695, %v593_v16  ;;  %v596_v29 = vsub.f32 %v1563_v56, %v580_v18  ;;  %1299 = vrcp.f32 %v649_v3  ;;  %v696_v30 = vadd.f32 %v695_v51, %v694_v8 }
 0x211   :  { %v709_v31 = vrot.slane %v708_v20, 2  ;;  %v699_v45 = vsel %vm468_vm1, %v1647_v25, 0.0  ;;  %v573_v43 = vmax.f32 %v571_v11, %v572_v22  ;;  %v670_v28 = vadd.f32 %v669_v24, %v1612_v2 }
 0x212   :  { %v700_v48 = vrot.slane %v699_v45, 4  ;;  %1301 = vpow2.f32 %v621_v26  ;;  %v627_v33 = vmul.f32 1.442695, %v596_v29  ;;  %v697_v35 = vrot.slane %v696_v30, 1 }
 0x213   :  { %v1653_v37 = vpop.eup %1291  ;;  %v710_v40 = vadd.f32 %v709_v31, %v708_v20  ;;  %v595_v41 = vsub.f32 %v1570_v61, %v573_v43  ;;  %1303 = vrcp.f32 %v670_v28  ;;  %v662_v56 = vrot.slane %v1616_v10, 1 }
 0x214   :  { %v701_v8 = vadd.f32 %v700_v48, %v699_v45  ;;  %v720_v17 = vsel %vm468_vm1, %v1653_v37, 0.0  ;;  %1305 = vpow2.f32 %v627_v33  ;;  %v698_v42 = vadd.f32 %v697_v35, %v696_v30 }
 0x215   :  { %v1294_v9 = vpop.eup %1293  ;;  %v721_v2 = vrot.slane %v720_v17, 4  ;;  %v625_v44 = vmul.f32 1.442695, %v595_v41  ;;  %v663_v46 = vadd.f32 %v662_v56, %v1616_v10  ;;  %v690_v47 = vrot.slane %v689_v14, 1 }
 0x216   :  { %v702_v51 = vrot.slane %v701_v8, 2  ;;  %v744_v39 = vmul.f32 %v1294_v9, %v1559_v50  ;;  %1307 = vrcp.f32 %v698_v42  ;;  %v676_v61 = vrot.slane %v1631_v34, 1 }
 0x217   :  { %v1296_v52 = vpop.eup %1295  ;;  %v722_v53 = vadd.f32 %v721_v2, %v720_v17  ;;  %1309 = vpow2.f32 %v625_v44  ;;  %v691_v55 = vadd.f32 %v690_v47, %v689_v14  ;;  %v711_v49 = vrot.slane %v710_v40, 1 }
 0x218   :  { %v703_v58 = vadd.f32 %v702_v51, %v701_v8  ;;  %812 = vperm.xlu0 %1233, %v744_v39   ;;  %774 = vst.msk [vmem:[%s1806_s5 + $0x8] sm:$0xff] %vm468_vm1, %v744_v39  ;;  %v742_v10 = vmul.f32 %v1296_v52, %v1565_v57  ;;  %1311 = vrcp.f32 %v663_v46  ;;  %v677_v50 = vadd.f32 %v676_v61, %v1631_v34 }
 0x219   :  { %v1298_v62 = vpop.eup %1297  ;;  %v723_v63 = vrot.slane %v722_v53, 2  ;;  %1313 = vrcp.f32 %v691_v55  ;;  %v712_v0 = vadd.f32 %v711_v49, %v710_v40  ;;  %v683_v1 = vrot.slane %v1624_v27, 1 }
 0x21a   :  { %v1300_v4 = vpop.eup %1299  ;;  %773 = vst.msk [vmem:[%s1806_s5] sm:$0xff] %vm468_vm1, %v742_v10  ;;  %v748_v21 = vmul.f32 %v1298_v62, %v1574_v6  ;;  %1315 = vrcp.f32 %v677_v50  ;;  %v704_v5 = vrot.slane %v703_v58, 1 }
 0x21b   :  { %v724_v57 = vadd.f32 %v723_v63, %v722_v53  ;;  %v746_v54 = vmul.f32 %v1300_v4, %v1578_v12  ;;  %1317 = vrcp.f32 %v712_v0  ;;  %v684_v34 = vadd.f32 %v683_v1, %v1624_v27  ;;  %v1331_v1 = vld [vmem:[#allocation2] sm:$0xff] }
 0x21c   :  { %v1676_v11 = vpop.eup %1301  ;;  %807 = vperm.xlu0 %1233, %v742_v10   ;;  %776 = vst.msk [vmem:[%s1806_s5 + $0x18] sm:$0xff] %vm468_vm1, %v748_v21  ;;  %v705_v13 = vadd.f32 %v704_v5, %v703_v58 }
 0x21d   :  { %v1304_v14 = vpop.eup %1303  ;;  %v713_v6 = vsel %vm468_vm1, %v1676_v11, 0.0  ;;  %775 = vst.msk [vmem:[%s1806_s5 + $0x10] sm:$0xff] %vm468_vm1, %v746_v54  ;;  %1319 = vrcp.f32 %v684_v34  ;;  %v725_v12 = vrot.slane %v724_v57, 1  ;;  %v1332_v34 = vld [vmem:[#allocation2 + $0x18] sm:$0xff] }
 0x21e   :  { %v1688_v27 = vpop.eup %1305  ;;  %v714_v16 = vrot.slane %v713_v6, 4  ;;  %v752_v18 = vmul.f32 %v1304_v14, %v1586_v23  ;;  %1321 = vrcp.f32 %v705_v13 }
 0x21f   :  { %v734_v3 = vsel %vm468_vm1, %v1688_v27, 0.0  ;;  %v726_v20 = vadd.f32 %v725_v12, %v724_v57 }
 0x220   :  { %v1308_v22 = vpop.eup %1307  ;;  %v715_v24 = vadd.f32 %v714_v16, %v713_v6  ;;  %v735_v26 = vrot.slane %v734_v3, 4  ;;  %822 = vperm.xlu0 %1233, %v748_v21   ;;  %778 = vst.msk [vmem:[%s1806_s5 + $0x28] sm:$0xff] %vm468_vm1, %v752_v18 }
 0x221   :  { %v1310_v29 = vpop.eup %1309  ;;  %v760_v30 = vmul.f32 %v1308_v22, %v1619_v19  ;;  %1323 = vrcp.f32 %v726_v20  ;;  %v797_v22 = vld [vmem:[#allocation2 + $0x40] sm:$0xff] }
 0x222   :  { %v1312_v31 = vpop.eup %1311  ;;  %v716_v23 = vrot.slane %v715_v24, 2  ;;  %v736_v45 = vadd.f32 %v735_v26, %v734_v3  ;;  %v727_v43 = vsel %vm468_vm1, %v1310_v29, 0.0  ;;  %v1333_v3 = vld [vmem:[#allocation2 + $0x10] sm:$0xff] }
 0x223   :  { %v1314_v28 = vpop.eup %1313  ;;  %v728_v48 = vrot.slane %v727_v43, 4  ;;  %852 = vperm.xlu1 %1234, %v760_v30   ;;  %782 = vst.msk [vmem:[%s1806_s5 + $0x48] sm:$0xff] %vm468_vm1, %v760_v30  ;;  %v750_v33 = vmul.f32 %v1312_v31, %v1589_v32 }
 0x224   :  { %v1316_v35 = vpop.eup %1315  ;;  %v717_v40 = vadd.f32 %v716_v23, %v715_v24  ;;  %v737_v41 = vrot.slane %v736_v45, 2  ;;  %817 = vperm.xlu0 %1233, %v746_v54   ;;  %v758_v19 = vmul.f32 %v1314_v28, %v1629_v36 }
 0x225   :  { %v1318_v56 = vpop.eup %1317  ;;  %v729_v8 = vadd.f32 %v728_v48, %v727_v43  ;;  %777 = vst.msk [vmem:[%s1806_s5 + $0x20] sm:$0xff] %vm468_vm1, %v750_v33  ;;  %v754_v17 = vmul.f32 %v1316_v35, %v1606_v60 }
 0x226   :  { %v738_v42 = vadd.f32 %v737_v41, %v736_v45  ;;  %781 = vst.msk [vmem:[%s1806_s5 + $0x40] sm:$0xff] %vm468_vm1, %v758_v19  ;;  %v764_v32 = vmul.f32 %v1318_v56, %v1636_v59  ;;  %v718_v9 = vrot.slane %v717_v40, 1 }
 0x227   :  { %v1320_v2 = vpop.eup %1319  ;;  %v730_v36 = vrot.slane %v729_v8, 2  ;;  %847 = vperm.xlu1 %1234, %v758_v19   ;;  %779 = vst.msk [vmem:[%s1806_s5 + $0x30] sm:$0xff] %vm468_vm1, %v754_v17  ;;  %v793_v19 = vld [vmem:[#allocation2 + $0x20] sm:$0xff] }
 0x228   :  { %v1322_v44 = vpop.eup %1321  ;;  %832 = vperm.xlu0 %1233, %v752_v18   ;;  %784 = vst.msk [vmem:[%s1806_s5 + $0x58] sm:$0xff] %vm468_vm1, %v764_v32  ;;  %v756_v60 = vmul.f32 %v1320_v2, %v1597_v38  ;;  %v719_v46 = vadd.f32 %v718_v9, %v717_v40  ;;  %v739_v59 = vrot.slane %v738_v42, 1 }
 0x229   :  { %v731_v47 = vadd.f32 %v730_v36, %v729_v8  ;;  %v762_v51 = vmul.f32 %v1322_v44, %v1647_v25  ;;  %v800_v8 = vld [vmem:[#allocation2 + $0x58] sm:$0xff] }
 0x22a   :  { %780 = vst.msk [vmem:[%s1806_s5 + $0x38] sm:$0xff] %vm468_vm1, %v756_v60  ;;  %1325 = vrcp.f32 %v719_v46  ;;  %v740_v39 = vadd.f32 %v739_v59, %v738_v42 }
 0x22b   :  { %v1324_v61 = vpop.eup %1323  ;;  %862 = vperm.xlu1 %1234, %v764_v32   ;;  %783 = vst.msk [vmem:[%s1806_s5 + $0x50] sm:$0xff] %vm468_vm1, %v762_v51  ;;  %v732_v38 = vrot.slane %v731_v47, 1 }
 0x22c   :  { %827 = vperm.xlu0 %1233, %v750_v33   ;;  %v768_v52 = vmul.f32 %v1324_v61, %v1653_v37  ;;  %1327 = vrcp.f32 %v740_v39  ;;  %v1334_v33 = vld [vmem:[#allocation2 + $0x28] sm:$0xff]  ;;  %v795_v61 = vld [vmem:[#allocation2 + $0x30] sm:$0xff] }
 0x22d   :  { %v733_v25 = vadd.f32 %v732_v38, %v731_v47  ;;  %v799_v38 = vld [vmem:[#allocation2 + $0x50] sm:$0xff] }
 0x22e   :  { %786 = vst.msk [vmem:[%s1806_s5 + $0x68] sm:$0xff] %vm468_vm1, %v768_v52 }
 0x22f   :  { %857 = vperm.xlu1 %1234, %v762_v51   ;;  %1329 = vrcp.f32 %v733_v25 }
 0x230   :  { %837 = vperm.xlu0 %1233, %v754_v17  }
 0x233   :  { %872 = vperm.xlu1 %1234, %v768_v52  }
 0x234   :  { %v1326_v53 = vpop.eup %1325  ;;  %842 = vperm.xlu0 %1233, %v756_v60  }
 0x235   :  { %v766_v55 = vmul.f32 %v1326_v53, %v1676_v11 }
 0x236   :  { %v1328_v49 = vpop.eup %1327 }
 0x237   :  { %867 = vperm.xlu1 %1234, %v766_v55   ;;  %785 = vst.msk [vmem:[%s1806_s5 + $0x60] sm:$0xff] %vm468_vm1, %v766_v55  ;;  %v772_v37 = vmul.f32 %v1328_v49, %v1688_v27 }
 0x239   :  { %v1330_v58 = vpop.eup %1329  ;;  %788 = vst.msk [vmem:[%s1806_s5 + $0x78] sm:$0xff] %vm468_vm1, %v772_v37 }
 0x23a   :  { %v770_v10 = vmul.f32 %v1330_v58, %v1310_v29 }
 0x23c   :  { %877 = vperm.xlu1 %1234, %v770_v10   ;;  %787 = vst.msk [vmem:[%s1806_s5 + $0x70] sm:$0xff] %vm468_vm1, %v770_v10  ;;  %s1387_s5 = smov [#allocation5]  }
 0x23d   :  { %s1059_s26 = sshll.u32 %s1387_s5, 4  ;;  %s1060_s26 = int_to_ptr.vmem [resolvable:$true] %s1059_s26 }
 0x23e   :  { %s1357_s27 = scalar_lea.vmem %s1060_s26, 256  ;;  %p1362_p9 = scmp.lt.s32.totalorder %s1060_s26, %s1060_s26 }
 0x23f   :  { %p1358_p8 = scmp.ne.s32.totalorder %s1060_s26, %s1357_s27  ;;  %p1363_p10 = scmp.lt.s32.totalorder %s1357_s27, %s1357_s27 }
 0x240   :  { %882 = vperm.xlu1 %1234, %v772_v37  }
 0x241   :  { %p1364_p11 = por %p1363_p10, %p1362_p9 }
 0x243   :  { %p1365_p12 = pnand %p1364_p11, %p1358_p8 }
 0x297   :  { %v813_v50 = vpop.permute.xlu0 %812 }
 0x298   :  { %v886_v62 = vmul.f32 %v813_v50, %v1446_v7 }
 0x29a   :  { %v908_v63 = vsel %vm61_vm0, %v886_v62, 0.0 }
 0x29b   :  { %v808_v0 = vpop.permute.xlu0 %807  ;;  %v909_v21 = vrot.slane %v908_v63, 4 }
 0x29c   :  { %v885_v4 = vmul.f32 %v1331_v1, %v808_v0 }
 0x29d   :  { %v910_v13 = vadd.f32 %v909_v21, %v908_v63 }
 0x29e   :  { %v901_v5 = vsel %vm61_vm0, %v885_v4, 0.0 }
 0x29f   :  { %v902_v57 = vrot.slane %v901_v5, 4  ;;  %v823_v54 = vpop.permute.xlu0 %822  ;;  %v911_v24 = vrot.slane %v910_v13, 2 }
 0x2a0   :  { %v888_v11 = vmul.f32 %v1332_v34, %v823_v54 }
 0x2a1   :  { %v903_v14 = vadd.f32 %v902_v57, %v901_v5  ;;  %v912_v40 = vadd.f32 %v911_v24, %v910_v13  ;;  %v796_v57 = vld [vmem:[#allocation2 + $0x38] sm:$0xff] }
 0x2a2   :  { %v922_v6 = vsel %vm61_vm0, %v888_v11, 0.0  ;;  %v853_v12 = vpop.permute.xlu1 %852 }
 0x2a3   :  { %v904_v27 = vrot.slane %v903_v14, 2  ;;  %v923_v16 = vrot.slane %v922_v6, 4  ;;  %v818_v7 = vpop.permute.xlu0 %817  ;;  %v894_v18 = vmul.f32 %v853_v12, %v1457_v15  ;;  %v913_v47 = vrot.slane %v912_v40, 1 }
 0x2a4   :  { %v887_v20 = vmul.f32 %v1333_v3, %v818_v7  ;;  %v802_v7 = vld [vmem:[#allocation2 + $0x68] sm:$0xff] }
 0x2a5   :  { %v924_v26 = vadd.f32 %v923_v16, %v922_v6  ;;  %v964_v29 = vsel %vm61_vm0, %v894_v18, 0.0  ;;  %v905_v23 = vadd.f32 %v904_v27, %v903_v14  ;;  %v914_v4 = vadd.f32 %v913_v47, %v912_v40 }
 0x2a6   :  { %v915_v30 = vsel %vm61_vm0, %v887_v20, 0.0  ;;  %v848_v31 = vpop.permute.xlu1 %847  ;;  %v965_v28 = vrot.slane %v964_v29, 4 }
 0x2a7   :  { %v916_v45 = vrot.slane %v915_v30, 4  ;;  %v833_v43 = vpop.permute.xlu0 %832  ;;  %v893_v48 = vmul.f32 %v848_v31, %v797_v22  ;;  %v925_v41 = vrot.slane %v924_v26, 2  ;;  %v906_v9 = vrot.slane %v905_v23, 1  ;;  %v801_v31 = vld [vmem:[#allocation2 + $0x60] sm:$0xff] }
 0x2a8   :  { %v890_v35 = vmul.f32 %v1334_v33, %v833_v43  ;;  %v966_v44 = vadd.f32 %v965_v28, %v964_v29 }
 0x2a9   :  { %v917_v15 = vadd.f32 %v916_v45, %v915_v30  ;;  %v957_v56 = vsel %vm61_vm0, %v893_v48, 0.0  ;;  %v926_v51 = vadd.f32 %v925_v41, %v924_v26  ;;  %v907_v37 = vadd.f32 %v906_v9, %v905_v23 }
 0x2aa   :  { %v936_v17 = vsel %vm61_vm0, %v890_v35, 0.0  ;;  %v958_v42 = vrot.slane %v957_v56, 4  ;;  %v863_v32 = vpop.permute.xlu1 %862  ;;  %v967_v58 = vrot.slane %v966_v44, 2 }
 0x2ab   :  { %v918_v2 = vrot.slane %v917_v15, 2  ;;  %v937_v36 = vrot.slane %v936_v17, 4  ;;  %v828_v60 = vpop.permute.xlu0 %827  ;;  %v896_v59 = vmul.f32 %v863_v32, %v800_v8  ;;  %v927_v21 = vrot.slane %v926_v51, 1 }
 0x2ac   :  { %v889_v46 = vmul.f32 %v828_v60, %v793_v19  ;;  %v959_v53 = vadd.f32 %v958_v42, %v957_v56  ;;  %v1030_v6 = vsel %vm1029_vm2, %v914_v4, %v907_v37  ;;  %v968_v3 = vadd.f32 %v967_v58, %v966_v44  ;;  %v804_v58 = vld [vmem:[#allocation2 + $0x78] sm:$0xff] }
 0x2ad   :  { %v919_v39 = vadd.f32 %v918_v2, %v917_v15  ;;  %v938_v52 = vadd.f32 %v937_v36, %v936_v17  ;;  %v978_v55 = vsel %vm61_vm0, %v896_v59, 0.0  ;;  %v928_v24 = vadd.f32 %v927_v21, %v926_v51  ;;  %v803_v2 = vld [vmem:[#allocation2 + $0x70] sm:$0xff] }
 0x2ae   :  { %v929_v25 = vsel %vm61_vm0, %v889_v46, 0.0  ;;  %v858_v49 = vpop.permute.xlu1 %857  ;;  %v979_v0 = vrot.slane %v978_v55, 4  ;;  %v960_v34 = vrot.slane %v959_v53, 2  ;;  %v969_v36 = vrot.slane %v968_v3, 1 }
 0x2af   :  { %v930_v10 = vrot.slane %v929_v25, 4  ;;  %v838_v50 = vpop.permute.xlu0 %837  ;;  %v920_v62 = vrot.slane %v919_v39, 1  ;;  %v895_v1 = vmul.f32 %v858_v49, %v799_v38  ;;  %v939_v54 = vrot.slane %v938_v52, 2 }
 0x2b0   :  { %v891_v63 = vmul.f32 %v838_v50, %v795_v61  ;;  %v980_v20 = vadd.f32 %v979_v0, %v978_v55  ;;  %v961_v45 = vadd.f32 %v960_v34, %v959_v53 }
 0x2b1   :  { %v931_v5 = vadd.f32 %v930_v10, %v929_v25  ;;  %v971_v13 = vsel %vm61_vm0, %v895_v1, 0.0  ;;  %v921_v18 = vadd.f32 %v920_v62, %v919_v39  ;;  %v940_v23 = vadd.f32 %v939_v54, %v938_v52 }
 0x2b2   :  { %v943_v11 = vsel %vm61_vm0, %v891_v63, 0.0  ;;  %v873_v14 = vpop.permute.xlu1 %872  ;;  %v972_v30 = vrot.slane %v971_v13, 4  ;;  %v981_v19 = vrot.slane %v980_v20, 2  ;;  %v962_v44 = vrot.slane %v961_v45, 1 }
 0x2b3   :  { %v932_v12 = vrot.slane %v931_v5, 2  ;;  %v944_v27 = vrot.slane %v943_v11, 4  ;;  %v843_v16 = vpop.permute.xlu0 %842  ;;  %v898_v28 = vmul.f32 %v873_v14, %v802_v7  ;;  %v1032_v15 = vsel %vm1031_vm3, %v921_v18, %v1030_v6 }
 0x2b4   :  { %v892_v22 = vmul.f32 %v843_v16, %v796_v57  ;;  %v973_v41 = vadd.f32 %v972_v30, %v971_v13  ;;  %v941_v59 = vrot.slane %v940_v23, 1  ;;  %v1034_v38 = vsel %vm1033_vm4, %v928_v24, %v1032_v15 }
 0x2b5   :  { %v933_v26 = vadd.f32 %v932_v12, %v931_v5  ;;  %v945_v29 = vadd.f32 %v944_v27, %v943_v11  ;;  %v992_v56 = vsel %vm61_vm0, %v898_v28, 0.0  ;;  %v982_v49 = vadd.f32 %v981_v19, %v980_v20 }
 0x2b6   :  { %v950_v43 = vsel %vm61_vm0, %v892_v22, 0.0  ;;  %v868_v48 = vpop.permute.xlu1 %867  ;;  %v974_v9 = vrot.slane %v973_v41, 2  ;;  %v993_v60 = vrot.slane %v992_v56, 4  ;;  %v942_v0 = vadd.f32 %v941_v59, %v940_v23 }
 0x2b7   :  { %v934_v33 = vrot.slane %v933_v26, 1  ;;  %v946_v35 = vrot.slane %v945_v29, 2  ;;  %v951_v40 = vrot.slane %v950_v43, 4  ;;  %v897_v8 = vmul.f32 %v868_v48, %v801_v31 }
 0x2b8   :  { %v975_v39 = vadd.f32 %v974_v9, %v973_v41  ;;  %v994_v52 = vadd.f32 %v993_v60, %v992_v56  ;;  %v970_v57 = vadd.f32 %v969_v36, %v968_v3  ;;  %v963_v54 = vadd.f32 %v962_v44, %v961_v45 }
 0x2b9   :  { %v935_v17 = vadd.f32 %v934_v33, %v933_v26  ;;  %v947_v42 = vadd.f32 %v946_v35, %v945_v29  ;;  %v952_v32 = vadd.f32 %v951_v40, %v950_v43  ;;  %v985_v46 = vsel %vm61_vm0, %v897_v8, 0.0 }
 0x2ba   :  { %v986_v25 = vrot.slane %v985_v46, 4  ;;  %v976_v50 = vrot.slane %v975_v39, 1  ;;  %v995_v4 = vrot.slane %v994_v52, 2  ;;  %v983_v13 = vrot.slane %v982_v49, 1 }
 0x2bb   :  { %v948_v47 = vrot.slane %v947_v42, 1  ;;  %v953_v51 = vrot.slane %v952_v32, 2  ;;  %v878_v61 = vpop.permute.xlu1 %877  ;;  %v1036_v55 = vsel %vm1035_vm5, %v935_v17, %v1034_v38  ;;  %v1043_v29 = vsel %vm1029_vm2, %v970_v57, %v963_v54 }
 0x2bc   :  { %v899_v53 = vmul.f32 %v878_v61, %v803_v2  ;;  %v987_v62 = vadd.f32 %v986_v25, %v985_v46  ;;  %v1038_v12 = vsel %vm1037_vm6, %v942_v0, %v1036_v55  ;;  %v977_v27 = vadd.f32 %v976_v50, %v975_v39 }
 0x2bd   :  { %v954_v37 = vadd.f32 %v953_v51, %v952_v32  ;;  %v949_v10 = vadd.f32 %v948_v47, %v947_v42  ;;  %v996_v20 = vadd.f32 %v995_v4, %v994_v52  ;;  %v984_v43 = vadd.f32 %v983_v13, %v982_v49 }
 0x2be   :  { %v999_v63 = vsel %vm61_vm0, %v899_v53, 0.0  ;;  %v988_v34 = vrot.slane %v987_v62, 2  ;;  %v1044_v23 = vsel %vm1031_vm3, %v977_v27, %v1043_v29 }
 0x2bf   :  { %v955_v1 = vrot.slane %v954_v37, 1  ;;  %v1000_v21 = vrot.slane %v999_v63, 4  ;;  %v883_v5 = vpop.permute.xlu1 %882  ;;  %v1040_v18 = vsel %vm1039_vm7, %v949_v10, %v1038_v12  ;;  %v997_v28 = vrot.slane %v996_v20, 1 }
 0x2c0   :  { %v900_v11 = vmul.f32 %v883_v5, %v804_v58  ;;  %v989_v16 = vadd.f32 %v988_v34, %v987_v62  ;;  %v1045_v35 = vsel %vm1033_vm4, %v984_v43, %v1044_v23 }
 0x2c1   :  { %v956_v14 = vadd.f32 %v955_v1, %v954_v37  ;;  %v1001_v6 = vadd.f32 %v1000_v21, %v999_v63  ;;  %v998_v19 = vadd.f32 %v997_v28, %v996_v20 }
 0x2c2   :  { %v1006_v7 = vsel %vm61_vm0, %v900_v11, 0.0  ;;  %v990_v3 = vrot.slane %v989_v16, 1 }
 0x2c3   :  { %v1002_v22 = vrot.slane %v1001_v6, 2  ;;  %v1007_v24 = vrot.slane %v1006_v7, 4  ;;  %v1042_v26 = vsel %vm1041_vm8, %v956_v14, %v1040_v18 }
 0x2c4   :  { %1052 = vst.msk [vmem:[#allocation5] sm:$0xff] %vm61_vm0, %v1042_v26  ;;  %v991_v45 = vadd.f32 %v990_v3, %v989_v16 }
 0x2c5   :  { %v1003_v30 = vadd.f32 %v1002_v22, %v1001_v6  ;;  %v1008_v31 = vadd.f32 %v1007_v24, %v1006_v7 }
 0x2c6   :  { %v1046_v41 = vsel %vm1035_vm5, %v991_v45, %v1045_v35 }
 0x2c7   :  { %v1004_v48 = vrot.slane %v1003_v30, 1  ;;  %v1009_v33 = vrot.slane %v1008_v31, 2  ;;  %v1047_v17 = vsel %vm1037_vm6, %v998_v19, %v1046_v41 }
 0x2c9   :  { %v1010_v40 = vadd.f32 %v1009_v33, %v1008_v31  ;;  %v1005_v15 = vadd.f32 %v1004_v48, %v1003_v30 }
 0x2cb   :  { %v1011_v56 = vrot.slane %v1010_v40, 1  ;;  %v1048_v42 = vsel %vm1039_vm7, %v1005_v15, %v1047_v17 }
 0x2cd   :  { %v1012_v8 = vadd.f32 %v1011_v56, %v1010_v40 }
 0x2cf   :  { %v1049_v32 = vsel %vm1041_vm8, %v1012_v8, %v1048_v42 }
 0x2d0   :  { %1053 = vst.msk [vmem:[#allocation5 + $0x8] sm:$0xff] %vm61_vm0, %v1049_v32 }
 0x2d1   :  { %1368 = shalt.err (!%p1365_p12)
}
 0x2d2   :  { %s1369_s7 = scalar_lea.hbm %s1805_s4, 256 }
 0x2d3   :  { %p1370_p13 = scmp.ne.s32.totalorder %s1805_s4, %s1369_s7  ;;  %p1373_p0 = scmp.lt.u32.totalorder %s1369_s7, %s1805_s4 }
 0x2d5   :  { %p1375_p1 = pnand %p1373_p0, %p1370_p13 }
 0x2d7   :  { %1378 = shalt.err (!%p1375_p1)
}
 0x2d8   :  { %1065 = dma.vmem_to_hbm [thread:$0]  %s1060_s26, 256, %s1805_s4, [#allocation4], %s1384_s28, %s1384_s28, %s1385_s29  }
 0x2d9   :  { %1381 = dma.done.wait [#allocation4], 256  }
 0x2da   :  { %1382 = vsyncadd [#allocation4], 4294967040 }
 0x2db   :  { %1073 = vsyncpa [#allocation3], 1 }
 0x2dc   :  { %1074 = vsyncpa [#allocation4], 1 }

</bundles_post_ra>
